<compile_context>
chip_gen: v7x
topology: tpu7x:2x2x1
jax: 0.10.0
libtpu: 0.0.40
codegen_flags: <defaults>
</compile_context>

<pallas_src>
import jax
import jax.numpy as jnp
import numpy as np
from jax import lax
from jax.experimental import pallas as pl
from jax.experimental.pallas import tpu as pltpu


_CPAD = 128                           # lane-dense classifier output width
_VMEM_LIMIT = 32 * 1024 * 1024        # safe scoped limit on v5e/v6e/v7x
_RESIDENT_WF_BYTES = 6 * 1024 * 1024  # keep bf16 wf VMEM-resident below this

# Small compat shim (newer jax: CompilerParams; older: TPUCompilerParams).
_CompilerParams = getattr(pltpu, "CompilerParams", None) or getattr(
    pltpu, "TPUCompilerParams")


def _round_up(v, m):
    return (v + m - 1) // m * m


def _static_pow(x, p):
    """x**p with repeated multiplies when p is a small integer (VPU, not EUP)."""
    p_f = float(p)
    p_i = int(round(p_f))
    if abs(p_f - p_i) < 1e-12 and 1 <= p_i <= 8:
        r = x
        for _ in range(p_i - 1):
            r = r * x
        return r
    return x ** p_f


def _pick_tiles(n, k_in, d):
    """Generation-gated tile selection: 256-row tiles for v6e/v7x (256x256 MXU),
    128 for v5e (128x128 MXU), with a small-N fallback.  wf stays resident
    (single K block) whenever it fits a v7x-safe VMEM budget."""
    kind = ""
    try:
        kind = jax.devices()[0].device_kind.lower()
    except Exception:
        pass
    big_mxu = any(t in kind for t in ("v6", "v7", "7x"))
    tm = min(256 if big_mxu else 128, _round_up(n, 8))
    n_pad = _round_up(n, tm)
    k_pad128 = _round_up(k_in, 128)
    if k_pad128 * d * 2 <= _RESIDENT_WF_BYTES:   # bf16 wf resident -> K axis = 1
        tk = k_pad128
    else:
        tk = 512 if big_mxu else 256
    k_pad = _round_up(k_in, tk)
    return tm, n_pad, tk, k_pad


# ----------------------------------------------------------------------------
# Fused kernel: feature matmul (K tiled) + instance classifier + streaming MIL
# bag aggregation + bag classifier.  grid = (row_tiles, k_tiles).
# ----------------------------------------------------------------------------
def _make_fused_kernel(mode, p_val, num_bags, tm, b_pad):
    use_mxu_rowsum = tm >= 128      # (1,tm)x(tm,D) indicator matmul on the MXU

    def kernel(off_ref, len_ref, tfirst_ref, tnb_ref,         # SMEM prefetch
               x_ref, wf_ref, bf_ref, wc_ref, bc_ref,         # VMEM inputs
               ins_ref, obag_ref,                              # VMEM outputs
               mm_acc_ref, bag_acc_ref, *lse_scratch):         # VMEM scratch
        aux_ref = lse_scratch[0] if lse_scratch else None
        i = pl.program_id(0)
        k = pl.program_id(1)
        ni = pl.num_programs(0)
        nk = pl.num_programs(1)

        @pl.when(k == 0)
        def _init_mm():
            mm_acc_ref[...] = jnp.zeros_like(mm_acc_ref)

        @pl.when((i == 0) & (k == 0))
        def _init_bags():
            if mode in ("mean", "p_norm"):
                bag_acc_ref[...] = jnp.zeros_like(bag_acc_ref)
            else:  # "max" / "LSE": running max
                bag_acc_ref[...] = jnp.full(bag_acc_ref.shape, -jnp.inf,
                                            bag_acc_ref.dtype)
            if mode == "LSE":
                aux_ref[...] = jnp.zeros_like(aux_ref)

        # bf16 operands, f32 accumulation in VMEM scratch (MXU).
        mm_acc_ref[...] += jnp.dot(x_ref[...], wf_ref[...],
                                   preferred_element_type=jnp.float32)

        # NOTE(correctness): ins_ref / obag_ref are written only on the last
        # inner-axis iteration; this relies on their block index being constant
        # across that axis so the block stays VMEM-resident until written.
        @pl.when(k == nk - 1)
        def _epilogue():
            feat = mm_acc_ref[...] + bf_ref[...]       # (tm, D) f32, VMEM only
            ins_ref[...] = (jnp.dot(feat.astype(jnp.bfloat16), wc_ref[...],
                                    preferred_element_type=jnp.float32)
                            + bc_ref[...])

            # ---- streaming MIL aggregation over the intersecting bags ----
            t_lo = i * tm
            row_s = t_lo + lax.broadcasted_iota(jnp.int32, (tm, 1), 0)
            col_l = t_lo + lax.broadcasted_iota(jnp.int32, (1, tm), 1)
            first = tfirst_ref[i]

            def bag_update(j, carry):
                b = first + j
                off = off_ref[b]
                ln = len_ref[b]
                if mode in ("mean", "p_norm"):
                    if mode == "mean":
                        vals = feat
                        inv_len = 1.0 / jnp.maximum(ln, 1).astype(jnp.float32)
                    else:
                        vals = _static_pow(jnp.maximum(feat, 0.0), p_val)
                        inv_len = None
                    if use_mxu_rowsum:
                        ind = ((col_l >= off) & (col_l < off + ln)
                               ).astype(jnp.float32)            # (1, tm)
                        s = jnp.dot(ind, vals,
                                    preferred_element_type=jnp.float32)
                    else:
                        in_bag = (row_s >= off) & (row_s < off + ln)
                        s = jnp.sum(jnp.where(in_bag, vals, 0.0),
                                    axis=0, keepdims=True)
                    if inv_len is not None:
                        s = s * inv_len
                    bag_acc_ref[pl.ds(b, 1), :] += s
                elif mode == "max":
                    in_bag = (row_s >= off) & (row_s < off + ln)
                    mx = jnp.max(jnp.where(in_bag, feat, -jnp.inf),
                                 axis=0, keepdims=True)
                    bag_acc_ref[pl.ds(b, 1), :] = jnp.maximum(
                        bag_acc_ref[pl.ds(b, 1), :], mx)
                else:  # "LSE" — online logsumexp (running max + running sum)
                    in_bag = (row_s >= off) & (row_s < off + ln)
                    g = jnp.where(in_bag, p_val * feat, -jnp.inf)
                    tmax = jnp.max(g, axis=0, keepdims=True)        # (1, D)
                    m_old = bag_acc_ref[pl.ds(b, 1), :]
                    l_old = aux_ref[pl.ds(b, 1), :]
                    m_new = jnp.maximum(m_old, tmax)
                    alpha = jnp.exp(m_old - m_new)
                    psum = jnp.sum(jnp.exp(g - m_new), axis=0, keepdims=True)
                    bag_acc_ref[pl.ds(b, 1), :] = m_new
                    aux_ref[pl.ds(b, 1), :] = alpha * l_old + psum
                return carry

            lax.fori_loop(0, tnb_ref[i], bag_update, 0)

            @pl.when(i == ni - 1)
            def _finalize():
                acc = bag_acc_ref[...]                          # (b_pad, D)
                if mode in ("mean", "max"):
                    bag = acc
                elif mode == "p_norm":
                    bag = acc ** (1.0 / p_val)                  # only (b_pad, D)
                else:  # "LSE"
                    bag = acc + jnp.log(aux_ref[...])
                valid = (lax.broadcasted_iota(jnp.int32, (b_pad, 1), 0)
                         < num_bags)
                bag = jnp.where(valid, bag, 0.0)
                obag_ref[...] = (jnp.dot(bag.astype(jnp.bfloat16), wc_ref[...],
                                         preferred_element_type=jnp.float32)
                                 + bc_ref[...])

    return kernel


# ----------------------------------------------------------------------------
# Feat_agg forward (Pallas)
# ----------------------------------------------------------------------------
def feat_agg_forward(x, len_list, params, mode, p_val):
    """Mirrors Feat_agg.forward.  Returns {'bag': y_bag, 'ins': y_ins}."""
    if mode not in ("mean", "max", "p_norm", "LSE"):
        raise ValueError("None MIL_f")

    n = x.shape[0]
    x_flat = x.reshape(n, -1)
    k_in = x_flat.shape[1]
    d = params["wf"].shape[1]
    c = params["wc_t"].shape[1]

    tm, n_pad, tk, k_pad = _pick_tiles(n, k_in, d)
    n_tiles = n_pad // tm
    k_tiles = k_pad // tk

    # bf16 matmul operands via jnp.pad (no zeros+scatter extra HBM pass).
    x_p = jnp.pad(x_flat.astype(jnp.bfloat16),
                  ((0, n_pad - n), (0, k_pad - k_in)))
    wf_p = jnp.pad(params["wf"].astype(jnp.bfloat16),
                   ((0, k_pad - k_in), (0, 0)))
    bf = params["bf"].reshape(1, d).astype(jnp.float32)
    wc_p = jnp.pad(params["wc_t"].astype(jnp.bfloat16),
                   ((0, 0), (0, _CPAD - c)))
    bc_p = jnp.pad(params["bc"].reshape(1, c).astype(jnp.float32),
                   ((0, 0), (0, _CPAD - c)))

    # Bag bookkeeping -> SMEM scalar prefetch.
    lengths = jnp.asarray(len_list, dtype=jnp.int32)
    num_bags = int(lengths.shape[0])
    offsets = jnp.concatenate([jnp.zeros((1,), jnp.int32),
                               jnp.cumsum(lengths)[:-1]]).astype(jnp.int32)
    b_pad = _round_up(num_bags, 8)

    # Per-row-tile first intersecting bag and intersecting-bag count.
    # Bags are contiguous row ranges, so two searchsorteds suffice.
    tile_lo = jnp.arange(n_tiles, dtype=jnp.int32) * tm
    ends = offsets + lengths
    tile_first = jnp.searchsorted(ends, tile_lo, side="right").astype(jnp.int32)
    tile_last = jnp.searchsorted(offsets, tile_lo + tm,
                                 side="left").astype(jnp.int32)
    tile_nb = jnp.maximum(tile_last - tile_first, 0).astype(jnp.int32)

    kernel = _make_fused_kernel(mode, float(p_val), num_bags, tm, b_pad)
    scratch = [pltpu.VMEM((tm, d), jnp.float32),     # matmul f32 accumulator
               pltpu.VMEM((b_pad, d), jnp.float32)]  # bag acc / running max
    if mode == "LSE":
        scratch.append(pltpu.VMEM((b_pad, d), jnp.float32))  # LSE running sum

    ins_pad, bag_pad = pl.pallas_call(
        kernel,
        out_shape=(jax.ShapeDtypeStruct((n_pad, _CPAD), jnp.float32),
                   jax.ShapeDtypeStruct((b_pad, _CPAD), jnp.float32)),
        grid_spec=pltpu.PrefetchScalarGridSpec(
            num_scalar_prefetch=4,     # offsets, lengths, tile_first, tile_nb
            grid=(n_tiles, k_tiles),
            in_specs=[
                pl.BlockSpec((tm, tk), lambda i, k, *_: (i, k)),    # x tile
                pl.BlockSpec((tk, d), lambda i, k, *_: (k, 0)),     # wf (resident if k_tiles==1)
                pl.BlockSpec((1, d), lambda i, k, *_: (0, 0)),      # bf
                pl.BlockSpec((d, _CPAD), lambda i, k, *_: (0, 0)),  # wc
                pl.BlockSpec((1, _CPAD), lambda i, k, *_: (0, 0)),  # bc
            ],
            out_specs=[
                pl.BlockSpec((tm, _CPAD), lambda i, k, *_: (i, 0)),     # ins logits
                pl.BlockSpec((b_pad, _CPAD), lambda i, k, *_: (0, 0)),  # bag logits
            ],
            scratch_shapes=scratch,
        ),
        compiler_params=_CompilerParams(
            # Row axis carries the bag accumulators / resident bag-logit block,
            # K is a reduction -> both "arbitrary".
            # TODO(synk): on v7x this leaves one TensorCore idle; a D-split
            # per-core partial accumulator would recover it.
            dimension_semantics=("arbitrary", "arbitrary"),
            vmem_limit_bytes=_VMEM_LIMIT),
    )(offsets, lengths, tile_first, tile_nb, x_p, wf_p, bf, wc_p, bc_p)

    return {"bag": bag_pad[:num_bags, :c], "ins": ins_pad[:n, :c]}


# ----------------------------------------------------------------------------
# Pure-JAX reference (same bf16-matmul numerics policy) for validation
# ----------------------------------------------------------------------------
def feat_agg_reference(x, len_list, params, mode, p_val):
    n = x.shape[0]
    xf = x.reshape(n, -1).astype(jnp.float32)
    feats = jnp.dot(xf.astype(jnp.bfloat16), params["wf"].astype(jnp.bfloat16),
                    preferred_element_type=jnp.float32) + params["bf"]
    wc = params["wc_t"].astype(jnp.bfloat16)
    y_ins = jnp.dot(feats.astype(jnp.bfloat16), wc,
                    preferred_element_type=jnp.float32) + params["bc"]
    bags, s = [], 0
    for bag_len in len_list:
        f = feats[s:s + bag_len]
        if mode == "mean":
            bags.append(f.mean(axis=0))
        elif mode == "max":
            bags.append(f.max(axis=0))
        elif mode == "p_norm":
            fr = jnp.maximum(f, 0.0)
            bags.append(jnp.sum(fr ** p_val, axis=0) ** (1.0 / p_val))
        elif mode == "LSE":
            g = p_val * f
            m = jnp.max(g, axis=0)
            bags.append(m + jnp.log(jnp.sum(jnp.exp(g - m), axis=0)))
        s += bag_len
    bag_feats = jnp.stack(bags)
    y_bag = jnp.dot(bag_feats.astype(jnp.bfloat16), wc,
                    preferred_element_type=jnp.float32) + params["bc"]
    return {"bag": y_bag, "ins": y_ins}


# ----------------------------------------------------------------------------
# Main
# ----------------------------------------------------------------------------
if __name__ == "__main__":
    key = jax.random.PRNGKey(0)
    k_x, k_wf, k_bf, k_wc, k_bc = jax.random.split(key, 5)

    num_class = 4
    C, H, W = 4, 16, 16
    len_list = [3, 5]                 # two bags -> N = 8 instances total
    N = sum(len_list)
    D_in = C * H * W                  # 1024
    D_feat = 512                      # ResNet18 feature dim

    x = jax.random.normal(k_x, (N, C, H, W), dtype=jnp.float32)

    params = {
        "wf": 0.02 * jax.random.normal(k_wf, (D_in, D_feat), jnp.float32),
        "bf": 0.01 * jax.random.normal(k_bf, (D_feat,), jnp.float32),
        # nn.Linear(512, num_class): weight (num_class, 512); kept transposed.
        "wc_t": 0.05 * jax.random.normal(k_wc, (D_feat, num_class), jnp.float32),
        "bc": 0.01 * jax.random.normal(k_bc, (num_class,), jnp.float32),
    }

    p_val = 3.0
    for mode in ("mean", "max", "p_norm", "LSE"):
        out = jax.block_until_ready(
            feat_agg_forward(x, len_list, params, mode, p_val))
        ref = feat_agg_reference(x, len_list, params, mode, p_val)
        np.testing.assert_allclose(np.asarray(out["ins"]),
                                   np.asarray(ref["ins"]),
                                   rtol=5e-3, atol=5e-3)
        np.testing.assert_allclose(np.asarray(out["bag"]),
                                   np.asarray(ref["bag"]),
                                   rtol=5e-3, atol=5e-3)

    print("KERNEL_OK")
</pallas_src>

<mosaic_0001>
module attributes {stable_mosaic.version = 11 : i64} {
  func.func @kernel(%arg0: i32, %arg1: i32, %arg2: memref<2xi32, #tpu.memory_space<smem>>, %arg3: memref<2xi32, #tpu.memory_space<smem>>, %arg4: memref<1xi32, #tpu.memory_space<smem>>, %arg5: memref<1xi32, #tpu.memory_space<smem>>, %arg6: memref<8x1024xbf16, #tpu.memory_space<vmem>>, %arg7: memref<1024x512xbf16, #tpu.memory_space<vmem>>, %arg8: memref<1x512xf32, #tpu.memory_space<vmem>>, %arg9: memref<512x128xbf16, #tpu.memory_space<vmem>>, %arg10: memref<1x128xf32, #tpu.memory_space<vmem>>, %arg11: memref<8x128xf32, #tpu.memory_space<vmem>>, %arg12: memref<8x128xf32, #tpu.memory_space<vmem>>, %arg13: memref<8x512xf32, #tpu.memory_space<vmem>>, %arg14: memref<8x512xf32, #tpu.memory_space<vmem>>) attributes {dimension_semantics = [#tpu.dimension_semantics<arbitrary>, #tpu.dimension_semantics<arbitrary>], iteration_bounds = array<i64: 1, 1>, scalar_prefetch = 4 : i64, scratch_operands = 2 : i64, tpu.core_type = #tpu.core_type<tc>, window_params = [{transform_indices = @transform_0, window_bounds = array<i64: 8, 1024>}, {transform_indices = @transform_1, window_bounds = array<i64: 1024, 512>}, {pipeline_mode = #tpu.pipeline_mode<synchronous>, transform_indices = @transform_2, window_bounds = array<i64: 1, 512>}, {pipeline_mode = #tpu.pipeline_mode<synchronous>, transform_indices = @transform_3, window_bounds = array<i64: 512, 128>}, {pipeline_mode = #tpu.pipeline_mode<synchronous>, transform_indices = @transform_4, window_bounds = array<i64: 1, 128>}, {transform_indices = @transform_5, window_bounds = array<i64: 8, 128>}, {pipeline_mode = #tpu.pipeline_mode<synchronous>, transform_indices = @transform_6, window_bounds = array<i64: 8, 128>}]} {
    %c0_i32 = arith.constant 0 : i32
    %0 = arith.cmpi eq, %arg1, %c0_i32 : i32
    %1 = arith.extui %0 : i1 to i32
    %c0_i32_0 = arith.constant 0 : i32
    %2 = arith.cmpi ne, %1, %c0_i32_0 : i32
    scf.if %2 {
      %cst_13 = arith.constant 0.000000e+00 : f32
      %17 = vector.broadcast %cst_13 : f32 to vector<8x512xf32>
      %c0_14 = arith.constant 0 : index
      %c0_15 = arith.constant 0 : index
      %18 = vector.load %arg13[%c0_14, %c0_15] : memref<8x512xf32, #tpu.memory_space<vmem>>, vector<8x512xf32>
      tpu.vector_store %arg13[%c0_14, %c0_15], %17 {strides = array<i32>} : memref<8x512xf32, #tpu.memory_space<vmem>>, vector<8x512xf32>,
    } else {
    }
    %c0_i32_1 = arith.constant 0 : i32
    %3 = arith.cmpi eq, %arg0, %c0_i32_1 : i32
    %c0_i32_2 = arith.constant 0 : i32
    %4 = arith.cmpi eq, %arg1, %c0_i32_2 : i32
    %5 = arith.andi %3, %4 : i1
    %6 = arith.extui %5 : i1 to i32
    %c0_i32_3 = arith.constant 0 : i32
    %7 = arith.cmpi ne, %6, %c0_i32_3 : i32
    scf.if %7 {
      %cst_13 = arith.constant 0.000000e+00 : f32
      %17 = vector.broadcast %cst_13 : f32 to vector<8x512xf32>
      %c0_14 = arith.constant 0 : index
      %c0_15 = arith.constant 0 : index
      %18 = vector.load %arg14[%c0_14, %c0_15] : memref<8x512xf32, #tpu.memory_space<vmem>>, vector<8x512xf32>
      tpu.vector_store %arg14[%c0_14, %c0_15], %17 {strides = array<i32>} : memref<8x512xf32, #tpu.memory_space<vmem>>, vector<8x512xf32>,
    } else {
    }
    %c0 = arith.constant 0 : index
    %c0_4 = arith.constant 0 : index
    %8 = vector.load %arg13[%c0, %c0_4] : memref<8x512xf32, #tpu.memory_space<vmem>>, vector<8x512xf32>
    %c0_5 = arith.constant 0 : index
    %c0_6 = arith.constant 0 : index
    %9 = vector.load %arg6[%c0_5, %c0_6] : memref<8x1024xbf16, #tpu.memory_space<vmem>>, vector<8x1024xbf16>
    %c0_7 = arith.constant 0 : index
    %c0_8 = arith.constant 0 : index
    %10 = vector.load %arg7[%c0_7, %c0_8] : memref<1024x512xbf16, #tpu.memory_space<vmem>>, vector<1024x512xbf16>
    %cst = arith.constant dense<0.000000e+00> : vector<8x512xf32>
    %11 = tpu.matmul %9, %10, %cst {dimension_numbers = #tpu.dot_dimension_numbers<[1], [0], [0], [1], [0, 0, 1, 1], [], []>} : vector<8x1024xbf16>, vector<1024x512xbf16>, vector<8x512xf32> -> vector<8x512xf32>
    %12 = arith.addf %8, %11 : vector<8x512xf32>
    %c0_9 = arith.constant 0 : index
    %c0_10 = arith.constant 0 : index
    %13 = vector.load %arg13[%c0_9, %c0_10] : memref<8x512xf32, #tpu.memory_space<vmem>>, vector<8x512xf32>
    tpu.vector_store %arg13[%c0_9, %c0_10], %12 {strides = array<i32>} : memref<8x512xf32, #tpu.memory_space<vmem>>, vector<8x512xf32>,
    %c0_i32_11 = arith.constant 0 : i32
    %14 = arith.cmpi eq, %arg1, %c0_i32_11 : i32
    %15 = arith.extui %14 : i1 to i32
    %c0_i32_12 = arith.constant 0 : i32
    %16 = arith.cmpi ne, %15, %c0_i32_12 : i32
    scf.if %16 {
      %c0_13 = arith.constant 0 : index
      %c0_14 = arith.constant 0 : index
      %17 = vector.load %arg13[%c0_13, %c0_14] : memref<8x512xf32, #tpu.memory_space<vmem>>, vector<8x512xf32>
      %c0_15 = arith.constant 0 : index
      %c0_16 = arith.constant 0 : index
      %18 = vector.load %arg8[%c0_15, %c0_16] : memref<1x512xf32, #tpu.memory_space<vmem>>, vector<1x512xf32>
      %19 = vector.broadcast %18 : vector<1x512xf32> to vector<8x512xf32>
      %20 = arith.addf %17, %19 : vector<8x512xf32>
      %21 = arith.truncf %20 : vector<8x512xf32> to vector<8x512xbf16>
      %c0_17 = arith.constant 0 : index
      %c0_18 = arith.constant 0 : index
      %22 = vector.load %arg9[%c0_17, %c0_18] : memref<512x128xbf16, #tpu.memory_space<vmem>>, vector<512x128xbf16>
      %cst_19 = arith.constant dense<0.000000e+00> : vector<8x128xf32>
      %23 = tpu.matmul %21, %22, %cst_19 {dimension_numbers = #tpu.dot_dimension_numbers<[1], [0], [0], [1], [0, 0, 1, 1], [], []>} : vector<8x512xbf16>, vector<512x128xbf16>, vector<8x128xf32> -> vector<8x128xf32>
      %c0_20 = arith.constant 0 : index
      %c0_21 = arith.constant 0 : index
      %24 = vector.load %arg10[%c0_20, %c0_21] : memref<1x128xf32, #tpu.memory_space<vmem>>, vector<1x128xf32>
      %25 = vector.broadcast %24 : vector<1x128xf32> to vector<8x128xf32>
      %26 = arith.addf %23, %25 : vector<8x128xf32>
      %c0_22 = arith.constant 0 : index
      %c0_23 = arith.constant 0 : index
      %27 = vector.load %arg11[%c0_22, %c0_23] : memref<8x128xf32, #tpu.memory_space<vmem>>, vector<8x128xf32>
      tpu.vector_store %arg11[%c0_22, %c0_23], %26 {strides = array<i32>} : memref<8x128xf32, #tpu.memory_space<vmem>>, vector<8x128xf32>,
      %c8_i32 = arith.constant 8 : i32
      %28 = arith.muli %arg0, %c8_i32 : i32
      %29 = tpu.iota {dimensions = array<i32: 0>} : vector<8x1xi32>
      %30 = vector.broadcast %28 : i32 to vector<8x1xi32>
      %31 = arith.addi %30, %29 : vector<8x1xi32>
      %32 = arith.index_cast %arg0 : i32 to index
      %33 = memref.load %arg4[%32] : memref<1xi32, #tpu.memory_space<smem>>
      %34 = arith.index_cast %arg0 : i32 to index
      %35 = memref.load %arg5[%34] : memref<1xi32, #tpu.memory_space<smem>>
      %c0_i32_24 = arith.constant 0 : i32
      %c0_i32_25 = arith.constant 0 : i32
      %36 = arith.subi %35, %c0_i32_25 : i32
      %37 = arith.addi %c0_i32_25, %36 : i32
      %c1_i32 = arith.constant 1 : i32
      scf.for %arg15 = %c0_i32_25 to %37 step %c1_i32  : i32 {
        %41 = arith.addi %33, %arg15 : i32
        %42 = arith.index_cast %41 : i32 to index
        %43 = memref.load %arg2[%42] : memref<2xi32, #tpu.memory_space<smem>>
        %44 = arith.index_cast %41 : i32 to index
        %45 = memref.load %arg3[%44] : memref<2xi32, #tpu.memory_space<smem>>
        %c1_i32_28 = arith.constant 1 : i32
        %46 = arith.maxsi %45, %c1_i32_28 : i32
        %47 = arith.sitofp %46 : i32 to f32
        %cst_29 = arith.constant 1.000000e+00 : f32
        %48 = arith.divf %cst_29, %47 : f32
        %49 = vector.broadcast %43 : i32 to vector<8x1xi32>
        %50 = arith.cmpi sge, %31, %49 : vector<8x1xi32>
        %51 = arith.addi %43, %45 : i32
        %52 = vector.broadcast %51 : i32 to vector<8x1xi32>
        %53 = arith.cmpi slt, %31, %52 : vector<8x1xi32>
        %54 = arith.andi %50, %53 : vector<8x1xi1>
        %cst_30 = arith.constant 0.000000e+00 : f32
        %55 = vector.shape_cast %54 : vector<8x1xi1> to vector<8x1xi1>
        %56 = vector.broadcast %55 : vector<8x1xi1> to vector<8x512xi1>
        %57 = vector.broadcast %cst_30 : f32 to vector<8x512xf32>
        %58 = arith.select %56, %20, %57 : vector<8x512xi1>, vector<8x512xf32>
        %cst_31 = arith.constant dense<0.000000e+00> : vector<512xf32>
        %59 = vector.multi_reduction <add>, %58, %cst_31 [0] : vector<8x512xf32> to vector<512xf32>
        %60 = vector.shape_cast %59 : vector<512xf32> to vector<1x512xf32>
        %61 = vector.broadcast %48 : f32 to vector<1x512xf32>
        %62 = arith.mulf %60, %61 : vector<1x512xf32>
        %63 = arith.index_cast %41 : i32 to index
        %c0_32 = arith.constant 0 : index
        %64 = vector.load %arg14[%63, %c0_32] : memref<8x512xf32, #tpu.memory_space<vmem>>, vector<1x512xf32>
        %65 = arith.addf %64, %62 : vector<1x512xf32>
        %66 = arith.index_cast %41 : i32 to index
        %c0_33 = arith.constant 0 : index
        %67 = vector.load %arg14[%66, %c0_33] : memref<8x512xf32, #tpu.memory_space<vmem>>, vector<1x512xf32>
        tpu.vector_store %arg14[%66, %c0_33], %65 {strides = array<i32>} : memref<8x512xf32, #tpu.memory_space<vmem>>, vector<1x512xf32>,
      }
      %c0_i32_26 = arith.constant 0 : i32
      %38 = arith.cmpi eq, %arg0, %c0_i32_26 : i32
      %39 = arith.extui %38 : i1 to i32
      %c0_i32_27 = arith.constant 0 : i32
      %40 = arith.cmpi ne, %39, %c0_i32_27 : i32
      scf.if %40 {
        %c0_28 = arith.constant 0 : index
        %c0_29 = arith.constant 0 : index
        %41 = vector.load %arg14[%c0_28, %c0_29] : memref<8x512xf32, #tpu.memory_space<vmem>>, vector<8x512xf32>
        %42 = tpu.iota {dimensions = array<i32: 0>} : vector<8x1xi32>
        %c2_i32 = arith.constant 2 : i32
        %43 = vector.broadcast %c2_i32 : i32 to vector<8x1xi32>
        %44 = arith.cmpi slt, %42, %43 : vector<8x1xi32>
        %cst_30 = arith.constant 0.000000e+00 : f32
        %45 = vector.shape_cast %44 : vector<8x1xi1> to vector<8x1xi1>
        %46 = vector.broadcast %45 : vector<8x1xi1> to vector<8x512xi1>
        %47 = vector.broadcast %cst_30 : f32 to vector<8x512xf32>
        %48 = arith.select %46, %41, %47 : vector<8x512xi1>, vector<8x512xf32>
        %49 = arith.truncf %48 : vector<8x512xf32> to vector<8x512xbf16>
        %c0_31 = arith.constant 0 : index
        %c0_32 = arith.constant 0 : index
        %50 = vector.load %arg9[%c0_31, %c0_32] : memref<512x128xbf16, #tpu.memory_space<vmem>>, vector<512x128xbf16>
        %cst_33 = arith.constant dense<0.000000e+00> : vector<8x128xf32>
        %51 = tpu.matmul %49, %50, %cst_33 {dimension_numbers = #tpu.dot_dimension_numbers<[1], [0], [0], [1], [0, 0, 1, 1], [], []>} : vector<8x512xbf16>, vector<512x128xbf16>, vector<8x128xf32> -> vector<8x128xf32>
        %c0_34 = arith.constant 0 : index
        %c0_35 = arith.constant 0 : index
        %52 = vector.load %arg10[%c0_34, %c0_35] : memref<1x128xf32, #tpu.memory_space<vmem>>, vector<1x128xf32>
        %53 = vector.broadcast %52 : vector<1x128xf32> to vector<8x128xf32>
        %54 = arith.addf %51, %53 : vector<8x128xf32>
        %c0_36 = arith.constant 0 : index
        %c0_37 = arith.constant 0 : index
        %55 = vector.load %arg12[%c0_36, %c0_37] : memref<8x128xf32, #tpu.memory_space<vmem>>, vector<8x128xf32>
        tpu.vector_store %arg12[%c0_36, %c0_37], %54 {strides = array<i32>} : memref<8x128xf32, #tpu.memory_space<vmem>>, vector<8x128xf32>,
      } else {
      }
    } else {
    }
    return
  }
  func.func @transform_0(%arg0: i32, %arg1: i32, %arg2: memref<2xi32, #tpu.memory_space<smem>>, %arg3: memref<2xi32, #tpu.memory_space<smem>>, %arg4: memref<1xi32, #tpu.memory_space<smem>>, %arg5: memref<1xi32, #tpu.memory_space<smem>>) -> (i32, i32) {
    %c0_i32 = arith.constant 0 : i32
    return %arg0, %arg1 : i32, i32
  }
  func.func @transform_1(%arg0: i32, %arg1: i32, %arg2: memref<2xi32, #tpu.memory_space<smem>>, %arg3: memref<2xi32, #tpu.memory_space<smem>>, %arg4: memref<1xi32, #tpu.memory_space<smem>>, %arg5: memref<1xi32, #tpu.memory_space<smem>>) -> (i32, i32) {
    %c0_i32 = arith.constant 0 : i32
    %c0_i32_0 = arith.constant 0 : i32
    return %arg1, %c0_i32 : i32, i32
  }
  func.func @transform_2(%arg0: i32, %arg1: i32, %arg2: memref<2xi32, #tpu.memory_space<smem>>, %arg3: memref<2xi32, #tpu.memory_space<smem>>, %arg4: memref<1xi32, #tpu.memory_space<smem>>, %arg5: memref<1xi32, #tpu.memory_space<smem>>) -> (i32, i32) {
    %c0_i32 = arith.constant 0 : i32
    %c0_i32_0 = arith.constant 0 : i32
    %c0_i32_1 = arith.constant 0 : i32
    return %c0_i32, %c0_i32_0 : i32, i32
  }
  func.func @transform_3(%arg0: i32, %arg1: i32, %arg2: memref<2xi32, #tpu.memory_space<smem>>, %arg3: memref<2xi32, #tpu.memory_space<smem>>, %arg4: memref<1xi32, #tpu.memory_space<smem>>, %arg5: memref<1xi32, #tpu.memory_space<smem>>) -> (i32, i32) {
    %c0_i32 = arith.constant 0 : i32
    %c0_i32_0 = arith.constant 0 : i32
    %c0_i32_1 = arith.constant 0 : i32
    return %c0_i32, %c0_i32_0 : i32, i32
  }
  func.func @transform_4(%arg0: i32, %arg1: i32, %arg2: memref<2xi32, #tpu.memory_space<smem>>, %arg3: memref<2xi32, #tpu.memory_space<smem>>, %arg4: memref<1xi32, #tpu.memory_space<smem>>, %arg5: memref<1xi32, #tpu.memory_space<smem>>) -> (i32, i32) {
    %c0_i32 = arith.constant 0 : i32
    %c0_i32_0 = arith.constant 0 : i32
    %c0_i32_1 = arith.constant 0 : i32
    return %c0_i32, %c0_i32_0 : i32, i32
  }
  func.func @transform_5(%arg0: i32, %arg1: i32, %arg2: memref<2xi32, #tpu.memory_space<smem>>, %arg3: memref<2xi32, #tpu.memory_space<smem>>, %arg4: memref<1xi32, #tpu.memory_space<smem>>, %arg5: memref<1xi32, #tpu.memory_space<smem>>) -> (i32, i32) {
    %c0_i32 = arith.constant 0 : i32
    %c0_i32_0 = arith.constant 0 : i32
    return %arg0, %c0_i32 : i32, i32
  }
  func.func @transform_6(%arg0: i32, %arg1: i32, %arg2: memref<2xi32, #tpu.memory_space<smem>>, %arg3: memref<2xi32, #tpu.memory_space<smem>>, %arg4: memref<1xi32, #tpu.memory_space<smem>>, %arg5: memref<1xi32, #tpu.memory_space<smem>>) -> (i32, i32) {
    %c0_i32 = arith.constant 0 : i32
    %c0_i32_0 = arith.constant 0 : i32
    %c0_i32_1 = arith.constant 0 : i32
    return %c0_i32, %c0_i32_0 : i32, i32
  }
}

</mosaic_0001>

<bundles_post_ra>
// kernel: tpu_custom_call.1
= control target key start
LH: loop header
LB: loop body
LE: loop exit
PB: predicated region body
PF: predicated region fallthrough
CT: control target
= control target key end

     0   :  { %s4204_s0 = inlined_call_operand.vmem [shape: s32[2], index: 0, kind: input, shape index: {}]   ;;  %s4205_s2 = inlined_call_operand.<no memory space> [shape: s32[1], index: 2, kind: input, shape index: {}]   ;;  %s4206_s3 = inlined_call_operand.<no memory space> [shape: s32[1], index: 3, kind: input, shape index: {}]   ;;  %s4207_s4 = inlined_call_operand.hbm [shape: bf16[8,1024], index: 4, kind: input, shape index: {}]   ;;  %s4208_s5 = inlined_call_operand.hbm [shape: bf16[1024,512], index: 5, kind: input, shape index: {}]   ;;  %s4209_s6 = inlined_call_operand.vmem [shape: f32[1,512], index: 6, kind: input, shape index: {}]   ;;  %s4210_s7 = inlined_call_operand.hbm [shape: bf16[512,128], index: 7, kind: input, shape index: {}]   ;;  %s4211_s8 = inlined_call_operand.vmem [shape: f32[1,128], index: 8, kind: input, shape index: {}]   ;;  %s4212_s9 = inlined_call_operand.hbm [shape: f32[8,128], index: 9, kind: output, shape index: {0}]   ;;  %s4213_s10 = inlined_call_operand.hbm [shape: f32[8,128], index: 10, kind: output, shape index: {1}]   ;;  %s4214_s1 = inlined_call_operand.vmem [shape: s32[2], index: 1, kind: input, shape index: {}]  }
   0x1   :  { %s16_s15 = sshll.u32 %s4204_s0, 4  ;;  %s20_s18 = sshll.u32 %s4214_s1, 4  ;;  %s17_s15 = int_to_ptr.vmem [resolvable:$true] %s16_s15  ;;  %s21_s18 = int_to_ptr.vmem [resolvable:$true] %s20_s18 }
   0x2   :  { %s3809_s19 = scalar_lea.vmem %s17_s15, 16  ;;  %p3814_p1 = scmp.lt.s32.totalorder %s17_s15, %s17_s15 }
   0x3   :  { %p3810_p0 = scmp.ne.s32.totalorder %s17_s15, %s3809_s19  ;;  %p3815_p2 = scmp.lt.s32.totalorder %s3809_s19, %s3809_s19 }
   0x5   :  { %p3816_p3 = por %p3815_p2, %p3814_p1 }
   0x7   :  { %p3817_p4 = pnand %p3816_p3, %p3810_p0 }
   0x9   :  { %3820 = shalt.err (!%p3817_p4)  }
   0xa   :  { %s3961_s20 = smov [#allocation5]   ;;  %s3821_s21 = scalar_lea.vmem %s21_s18, 16 }
   0xb   :  { %19 = dma.vmem_to_smem %s17_s15, 16, %s3961_s20, [#allocation4] }
   0xc   :  { %p3822_p5 = scmp.ne.s32.totalorder %s21_s18, %s3821_s21  ;;  %p3826_p6 = scmp.lt.s32.totalorder %s21_s18, %s21_s18 }
   0xd   :  { %p3827_p7 = scmp.lt.s32.totalorder %s3821_s21, %s3821_s21 }
   0xf   :  { %p3828_p8 = por %p3827_p7, %p3826_p6 }
  0x11   :  { %p3829_p9 = pnand %p3828_p8, %p3822_p5 }
  0x13   :  { %3832 = shalt.err (!%p3829_p9)  }
  0x14   :  { %s3962_s0 = smov [#allocation6]  }
  0x15   :  { %23 = dma.vmem_to_smem %s21_s18, 16, %s3962_s0, [#allocation4] }
  0x16   :  { %3947 = dma.done.wait [#allocation4], 32 }
  0x17   :  { %3948 = vsyncadd [#allocation4], 4294967264 }
  0x18   :  { %27 = sfence }
  0x19   :  { %28 = vsyncpa [#allocation10], 0 }
  0x1a   :  { %29 = vsyncpa [#allocation13], 0 }
  0x1b   :  { %30 = vsyncpa [#allocation11], 0 }
  0x1c   :  { %31 = vsyncpa [#allocation17], 0  ;;  %s3963_s1 = smov [#allocation12]   ;;  %s3833_s25 = scalar_lea.hbm %s4208_s5, 32768 }
  0x1d   :  { %s47_s22 = sshll.u32 %s3963_s1, 4  ;;  %p3834_p10 = scmp.ne.s32.totalorder %s4208_s5, %s3833_s25  ;;  %s48_s22 = int_to_ptr.vmem [resolvable:$true] %s47_s22 }
  0x1e   :  { %p3837_p11 = scmp.lt.u32.totalorder %s3833_s25, %s4208_s5 }
  0x20   :  { %p3839_p12 = pnand %p3837_p11, %p3834_p10 }
  0x22   :  { %3842 = shalt.err (!%p3839_p12)
}
  0x23   :  { %s3843_s30 = scalar_lea.vmem %s48_s22, 32768  ;;  %p3848_p0 = scmp.lt.s32.totalorder %s48_s22, %s48_s22 }
  0x24   :  { %p3844_p13 = scmp.ne.s32.totalorder %s48_s22, %s3843_s30  ;;  %p3849_p1 = scmp.lt.s32.totalorder %s3843_s30, %s3843_s30 }
  0x26   :  { %p3850_p2 = por %p3849_p1, %p3848_p0 }
  0x28   :  { %p3851_p3 = pnand %p3850_p2, %p3844_p13 }
  0x2a   :  { %3854 = shalt.err (!%p3851_p3)
}
  0x2b   :  { %s3964_s11 = smov 256   ;;  %s3965_s12 = smov 16  }
  0x2c   :  { %53 = dma.hbm_to_vmem [thread:$0]  %s4208_s5, 32768, %s48_s22, [#allocation13], %s3964_s11, %s3964_s11, %s3965_s12  }
  0x2d   :  { %s3966_s15 = smov [#allocation9]   ;;  %s3967_s17 = smov [#allocation14]  }
  0x2e   :  { %s38_s16 = sshll.u32 %s3966_s15, 4  ;;  %s61_s18 = sshll.u32 %s3967_s17, 4  ;;  %s39_s16 = int_to_ptr.vmem [resolvable:$true] %s38_s16  ;;  %s62_s18 = int_to_ptr.vmem [resolvable:$true] %s61_s18 }
  0x2f   :  { %s3855_s21 = scalar_lea.hbm %s4207_s4, 512 }
  0x30   :  { %p3856_p4 = scmp.ne.s32.totalorder %s4207_s4, %s3855_s21  ;;  %p3859_p5 = scmp.lt.u32.totalorder %s3855_s21, %s4207_s4 }
  0x32   :  { %p3861_p6 = pnand %p3859_p5, %p3856_p4 }
  0x34   :  { %3864 = shalt.err (!%p3861_p6)
}
  0x35   :  { %s3865_s5 = scalar_lea.vmem %s39_s16, 512  ;;  %p3870_p8 = scmp.lt.s32.totalorder %s39_s16, %s39_s16 }
  0x36   :  { %p3866_p7 = scmp.ne.s32.totalorder %s39_s16, %s3865_s5  ;;  %p3871_p9 = scmp.lt.s32.totalorder %s3865_s5, %s3865_s5 }
  0x38   :  { %p3872_p10 = por %p3871_p9, %p3870_p8 }
  0x3a   :  { %p3873_p11 = pnand %p3872_p10, %p3866_p7 }
  0x3c   :  { %3876 = shalt.err (!%p3873_p11)
}
  0x3d   :  { %41 = dma.hbm_to_vmem [thread:$0]  %s4207_s4, 512, %s39_s16, [#allocation10]  }
  0x3e   :  { %s3877_s28 = scalar_lea.hbm %s4210_s7, 4096 }
  0x3f   :  { %p3878_p12 = scmp.ne.s32.totalorder %s4210_s7, %s3877_s28  ;;  %p3881_p13 = scmp.lt.u32.totalorder %s3877_s28, %s4210_s7 }
  0x41   :  { %p3883_p0 = pnand %p3881_p13, %p3878_p12 }
  0x43   :  { %3886 = shalt.err (!%p3883_p0)
}
  0x44   :  { %s3887_s13 = scalar_lea.vmem %s62_s18, 4096  ;;  %p3892_p2 = scmp.lt.s32.totalorder %s62_s18, %s62_s18 }
  0x45   :  { %p3888_p1 = scmp.ne.s32.totalorder %s62_s18, %s3887_s13  ;;  %p3893_p3 = scmp.lt.s32.totalorder %s3887_s13, %s3887_s13 }
  0x47   :  { %p3894_p4 = por %p3893_p3, %p3892_p2 }
  0x49   :  { %p3895_p5 = pnand %p3894_p4, %p3888_p1 }
  0x4b   :  { %3898 = shalt.err (!%p3895_p5)
}
  0x4c   :  { %s3968_s4 = smov 64   ;;  %s3969_s14 = smov 4  }
  0x4d   :  { %67 = dma.hbm_to_vmem [thread:$0]  %s4210_s7, 4096, %s62_s18, [#allocation13], %s3968_s4, %s3968_s4, %s3969_s14  }
  0x4e   :  { %3949 = dma.done.wait [#allocation10], 512  }
  0x4f   :  { %3950 = vsyncadd [#allocation10], 4294966784 }
  0x50   :  { %3951 = dma.done.wait [#allocation13], 36864  }
  0x51   :  { %3952 = vsyncadd [#allocation13], 4294930432  ;;  %v3970_v0 = vmov 0.0   ;;  %v3351_v1 = vld [vmem:[#allocation12 + $0x4] ss:$16 sps:$4 sm:$0xff]   ;;  %v102_v49 = vld [vmem:[#allocation9 + $0x8] sm:$0xff] }
  0x52   :  { %93 = vst [vmem:[#allocation3] sm:$0xff] %v3970_v0  ;;  %94 = vst [vmem:[#allocation3 + $0x8] sm:$0xff] %v3970_v0  ;;  %v3353_v2 = vld [vmem:[#allocation12 + $0x204] ss:$16 sps:$4 sm:$0xff]   ;;  %1669 = vmatprep.subr.bf16.mxu0 %v3351_v1  ;;  %v3355_v3 = vld [vmem:[#allocation12] ss:$16 sps:$4 sm:$0xff]   ;;  %v4073_v52 = vcombine.high %v102_v49, %v102_v49 }
  0x53   :  { %95 = vst [vmem:[#allocation3 + $0x10] sm:$0xff] %v3970_v0  ;;  %96 = vst [vmem:[#allocation3 + $0x18] sm:$0xff] %v3970_v0  ;;  %v3356_v4 = vld [vmem:[#allocation12 + $0x200] ss:$16 sps:$4 sm:$0xff]   ;;  %1710 = vmatprep.subr.bf16.mxu1 %v3353_v2  ;;  %v3357_v5 = vld [vmem:[#allocation12 + $0x24] ss:$16 sps:$4 sm:$0xff]   ;;  %1670 = vmatpush1.bf16.msra.mxu0 %v3355_v3 }
  0x54   :  { %1711 = vmatpush1.bf16.msra.mxu1 %v3356_v4  ;;  %v3359_v6 = vld [vmem:[#allocation12 + $0x224] ss:$16 sps:$4 sm:$0xff]   ;;  %v3361_v7 = vld [vmem:[#allocation12 + $0x20] ss:$16 sps:$4 sm:$0xff]   ;;  %1671 = vmatprep.subr.bf16.mxu0 %v3357_v5  ;;  %p3191_p6 = scmp.le.s32.totalorder %s4206_s3, 0 }
  0x55   :  { %v3362_v8 = vld [vmem:[#allocation12 + $0x220] ss:$16 sps:$4 sm:$0xff]   ;;  %1712 = vmatprep.subr.bf16.mxu1 %v3359_v6  ;;  %v3363_v9 = vld [vmem:[#allocation12 + $0x44] ss:$16 sps:$4 sm:$0xff]   ;;  %1742 = vmatprep.mubr.bf16.mxu1 %v4073_v52  ;;  %s4147_s21 = smov (!%p3191_p6), 0  }
  0x56   :  { %v3365_v10 = vld [vmem:[#allocation12 + $0x244] ss:$16 sps:$4 sm:$0xff]   ;;  %v3367_v11 = vld [vmem:[#allocation12 + $0x40] ss:$16 sps:$4 sm:$0xff]  }
  0x57   :  { %v3368_v12 = vld [vmem:[#allocation12 + $0x240] ss:$16 sps:$4 sm:$0xff]   ;;  %1672 = vmatpush1.bf16.msra.mxu0 %v3361_v7  ;;  %v3369_v13 = vld [vmem:[#allocation12 + $0x64] ss:$16 sps:$4 sm:$0xff]  }
  0x58   :  { %1713 = vmatpush1.bf16.msra.mxu1 %v3362_v8  ;;  %1673 = vmatprep.subr.bf16.mxu0 %v3363_v9  ;;  %v3371_v14 = vld [vmem:[#allocation12 + $0x264] ss:$16 sps:$4 sm:$0xff]   ;;  %v3373_v15 = vld [vmem:[#allocation12 + $0x60] ss:$16 sps:$4 sm:$0xff]   ;;  %v4079_v8 = vcombine.low %v102_v49, %v102_v49 }
  0x59   :  { %1714 = vmatprep.subr.bf16.mxu1 %v3365_v10  ;;  %v3374_v16 = vld [vmem:[#allocation12 + $0x260] ss:$16 sps:$4 sm:$0xff]   ;;  %v3375_v17 = vld [vmem:[#allocation12 + $0x84] ss:$16 sps:$4 sm:$0xff]  }
  0x5a   :  { %v3377_v18 = vld [vmem:[#allocation12 + $0x284] ss:$16 sps:$4 sm:$0xff]   ;;  %v3379_v19 = vld [vmem:[#allocation12 + $0x80] ss:$16 sps:$4 sm:$0xff]  }
  0x5b   :  { %1674 = vmatpush1.bf16.msra.mxu0 %v3367_v11  ;;  %v3380_v20 = vld [vmem:[#allocation12 + $0x280] ss:$16 sps:$4 sm:$0xff]   ;;  %v3381_v21 = vld [vmem:[#allocation12 + $0xa4] ss:$16 sps:$4 sm:$0xff]  }
  0x5c   :  { %1715 = vmatpush1.bf16.msra.mxu1 %v3368_v12  ;;  %1675 = vmatprep.subr.bf16.mxu0 %v3369_v13  ;;  %v3383_v22 = vld [vmem:[#allocation12 + $0x2a4] ss:$16 sps:$4 sm:$0xff]   ;;  %v3385_v23 = vld [vmem:[#allocation12 + $0xa0] ss:$16 sps:$4 sm:$0xff]  }
  0x5d   :  { %1716 = vmatprep.subr.bf16.mxu1 %v3371_v14  ;;  %v3386_v24 = vld [vmem:[#allocation12 + $0x2a0] ss:$16 sps:$4 sm:$0xff]   ;;  %v3387_v25 = vld [vmem:[#allocation12 + $0xc4] ss:$16 sps:$4 sm:$0xff]  }
  0x5e   :  { %v3389_v26 = vld [vmem:[#allocation12 + $0x2c4] ss:$16 sps:$4 sm:$0xff]   ;;  %v3391_v27 = vld [vmem:[#allocation12 + $0xc0] ss:$16 sps:$4 sm:$0xff]  }
  0x5f   :  { %1676 = vmatpush1.bf16.msra.mxu0 %v3373_v15  ;;  %v3392_v28 = vld [vmem:[#allocation12 + $0x2c0] ss:$16 sps:$4 sm:$0xff]   ;;  %v3393_v29 = vld [vmem:[#allocation12 + $0xe4] ss:$16 sps:$4 sm:$0xff]  }
  0x60   :  { %1717 = vmatpush1.bf16.msra.mxu1 %v3374_v16  ;;  %1677 = vmatprep.subr.bf16.mxu0 %v3375_v17  ;;  %v3395_v30 = vld [vmem:[#allocation12 + $0x2e4] ss:$16 sps:$4 sm:$0xff]   ;;  %v3397_v31 = vld [vmem:[#allocation12 + $0xe0] ss:$16 sps:$4 sm:$0xff]  }
  0x61   :  { %1718 = vmatprep.subr.bf16.mxu1 %v3377_v18  ;;  %v3398_v32 = vld [vmem:[#allocation12 + $0x2e0] ss:$16 sps:$4 sm:$0xff]   ;;  %v3399_v33 = vld [vmem:[#allocation12 + $0x104] ss:$16 sps:$4 sm:$0xff]  }
  0x62   :  { %v3401_v34 = vld [vmem:[#allocation12 + $0x304] ss:$16 sps:$4 sm:$0xff]   ;;  %v3403_v35 = vld [vmem:[#allocation12 + $0x100] ss:$16 sps:$4 sm:$0xff]  }
  0x63   :  { %1678 = vmatpush1.bf16.msra.mxu0 %v3379_v19  ;;  %v3404_v36 = vld [vmem:[#allocation12 + $0x300] ss:$16 sps:$4 sm:$0xff]   ;;  %v3405_v37 = vld [vmem:[#allocation12 + $0x124] ss:$16 sps:$4 sm:$0xff]  }
  0x64   :  { %1719 = vmatpush1.bf16.msra.mxu1 %v3380_v20  ;;  %1679 = vmatprep.subr.bf16.mxu0 %v3381_v21  ;;  %v3407_v38 = vld [vmem:[#allocation12 + $0x324] ss:$16 sps:$4 sm:$0xff]   ;;  %v3409_v39 = vld [vmem:[#allocation12 + $0x120] ss:$16 sps:$4 sm:$0xff]  }
  0x65   :  { %1720 = vmatprep.subr.bf16.mxu1 %v3383_v22  ;;  %v3410_v40 = vld [vmem:[#allocation12 + $0x320] ss:$16 sps:$4 sm:$0xff]   ;;  %v3411_v41 = vld [vmem:[#allocation12 + $0x144] ss:$16 sps:$4 sm:$0xff]  }
  0x66   :  { %v3413_v42 = vld [vmem:[#allocation12 + $0x344] ss:$16 sps:$4 sm:$0xff]   ;;  %v3415_v43 = vld [vmem:[#allocation12 + $0x140] ss:$16 sps:$4 sm:$0xff]  }
  0x67   :  { %1680 = vmatpush1.bf16.msra.mxu0 %v3385_v23  ;;  %v3416_v44 = vld [vmem:[#allocation12 + $0x340] ss:$16 sps:$4 sm:$0xff]   ;;  %v3417_v45 = vld [vmem:[#allocation12 + $0x164] ss:$16 sps:$4 sm:$0xff]  }
  0x68   :  { %1721 = vmatpush1.bf16.msra.mxu1 %v3386_v24  ;;  %1681 = vmatprep.subr.bf16.mxu0 %v3387_v25  ;;  %v3419_v46 = vld [vmem:[#allocation12 + $0x364] ss:$16 sps:$4 sm:$0xff]   ;;  %v3421_v50 = vld [vmem:[#allocation12 + $0x160] ss:$16 sps:$4 sm:$0xff]  }
  0x69   :  { %1722 = vmatprep.subr.bf16.mxu1 %v3389_v26  ;;  %v101_v47 = vld [vmem:[#allocation9] sm:$0xff] }
  0x6a   :  { %v4071_v48 = vcombine.high %v101_v47, %v101_v47  ;;  %v3422_v51 = vld [vmem:[#allocation12 + $0x360] ss:$16 sps:$4 sm:$0xff]   ;;  %v3423_v53 = vld [vmem:[#allocation12 + $0x184] ss:$16 sps:$4 sm:$0xff]   ;;  %v4077_v7 = vcombine.low %v101_v47, %v101_v47 }
  0x6b   :  { %1682 = vmatpush1.bf16.msra.mxu0 %v3391_v27  ;;  %v3425_v54 = vld [vmem:[#allocation12 + $0x384] ss:$16 sps:$4 sm:$0xff]   ;;  %v3427_v55 = vld [vmem:[#allocation12 + $0x180] ss:$16 sps:$4 sm:$0xff]  }
  0x6c   :  { %1723 = vmatpush1.bf16.msra.mxu1 %v3392_v28  ;;  %1683 = vmatprep.subr.bf16.mxu0 %v3393_v29  ;;  %v3428_v56 = vld [vmem:[#allocation12 + $0x380] ss:$16 sps:$4 sm:$0xff]   ;;  %v3429_v57 = vld [vmem:[#allocation12 + $0x1a4] ss:$16 sps:$4 sm:$0xff]  }
  0x6d   :  { %1724 = vmatprep.subr.bf16.mxu1 %v3395_v30  ;;  %1701 = vmatprep.mubr.bf16.mxu0 %v4071_v48  ;;  %v3431_v58 = vld [vmem:[#allocation12 + $0x3a4] ss:$16 sps:$4 sm:$0xff]   ;;  %v3433_v59 = vld [vmem:[#allocation12 + $0x1a0] ss:$16 sps:$4 sm:$0xff]  }
  0x6e   :  { %v3434_v60 = vld [vmem:[#allocation12 + $0x3a0] ss:$16 sps:$4 sm:$0xff]   ;;  %v3435_v61 = vld [vmem:[#allocation12 + $0x1c4] ss:$16 sps:$4 sm:$0xff]  }
  0x6f   :  { %1684 = vmatpush1.bf16.msra.mxu0 %v3397_v31  ;;  %v3437_v62 = vld [vmem:[#allocation12 + $0x3c4] ss:$16 sps:$4 sm:$0xff]   ;;  %v3439_v63 = vld [vmem:[#allocation12 + $0x1c0] ss:$16 sps:$4 sm:$0xff]  }
  0x70   :  { %1725 = vmatpush1.bf16.msra.mxu1 %v3398_v32  ;;  %1685 = vmatprep.subr.bf16.mxu0 %v3399_v33  ;;  %v3440_v0 = vld [vmem:[#allocation12 + $0x3c0] ss:$16 sps:$4 sm:$0xff]   ;;  %v3441_v1 = vld [vmem:[#allocation12 + $0x1e4] ss:$16 sps:$4 sm:$0xff]  }
  0x71   :  { %1726 = vmatprep.subr.bf16.mxu1 %v3401_v34  ;;  %v3443_v2 = vld [vmem:[#allocation12 + $0x3e4] ss:$16 sps:$4 sm:$0xff]   ;;  %v3445_v3 = vld [vmem:[#allocation12 + $0x1e0] ss:$16 sps:$4 sm:$0xff]   ;;  %v4085_v34 = vld [vmem:[#allocation9 + $0x18] sm:$0xff] }
  0x72   :  { %v3446_v4 = vld [vmem:[#allocation12 + $0x3e0] ss:$16 sps:$4 sm:$0xff]   ;;  %v3453_v5 = vld [vmem:[#allocation12 + $0x404] ss:$16 sps:$4 sm:$0xff]  }
  0x73   :  { %1686 = vmatpush1.bf16.msra.mxu0 %v3403_v35  ;;  %v3456_v6 = vld [vmem:[#allocation12 + $0x604] ss:$16 sps:$4 sm:$0xff]   ;;  %v3451_v9 = vld [vmem:[#allocation12 + $0x400] ss:$16 sps:$4 sm:$0xff]  }
  0x74   :  { %1727 = vmatpush1.bf16.msra.mxu1 %v3404_v36  ;;  %1687 = vmatprep.subr.bf16.mxu0 %v3405_v37  ;;  %v3454_v10 = vld [vmem:[#allocation12 + $0x600] ss:$16 sps:$4 sm:$0xff]   ;;  %v3459_v11 = vld [vmem:[#allocation12 + $0x424] ss:$16 sps:$4 sm:$0xff]  }
  0x75   :  { %1728 = vmatprep.subr.bf16.mxu1 %v3407_v38  ;;  %v3462_v12 = vld [vmem:[#allocation12 + $0x624] ss:$16 sps:$4 sm:$0xff]   ;;  %v3457_v13 = vld [vmem:[#allocation12 + $0x420] ss:$16 sps:$4 sm:$0xff]   ;;  %v4093_v38 = vcombine.high %v4085_v34, %v4085_v34 }
  0x76   :  { %v3460_v14 = vld [vmem:[#allocation12 + $0x620] ss:$16 sps:$4 sm:$0xff]   ;;  %v3465_v15 = vld [vmem:[#allocation12 + $0x444] ss:$16 sps:$4 sm:$0xff]  }
  0x77   :  { %1688 = vmatpush1.bf16.msra.mxu0 %v3409_v39  ;;  %v3468_v16 = vld [vmem:[#allocation12 + $0x644] ss:$16 sps:$4 sm:$0xff]   ;;  %v3463_v17 = vld [vmem:[#allocation12 + $0x440] ss:$16 sps:$4 sm:$0xff]  }
  0x78   :  { %1729 = vmatpush1.bf16.msra.mxu1 %v3410_v40  ;;  %1689 = vmatprep.subr.bf16.mxu0 %v3411_v41  ;;  %v3466_v18 = vld [vmem:[#allocation12 + $0x640] ss:$16 sps:$4 sm:$0xff]   ;;  %v3471_v19 = vld [vmem:[#allocation12 + $0x464] ss:$16 sps:$4 sm:$0xff]  }
  0x79   :  { %1730 = vmatprep.subr.bf16.mxu1 %v3413_v42  ;;  %v3474_v20 = vld [vmem:[#allocation12 + $0x664] ss:$16 sps:$4 sm:$0xff]   ;;  %v3469_v21 = vld [vmem:[#allocation12 + $0x460] ss:$16 sps:$4 sm:$0xff]  }
  0x7a   :  { %v3472_v22 = vld [vmem:[#allocation12 + $0x660] ss:$16 sps:$4 sm:$0xff]   ;;  %v3477_v23 = vld [vmem:[#allocation12 + $0x484] ss:$16 sps:$4 sm:$0xff]  }
  0x7b   :  { %1690 = vmatpush1.bf16.msra.mxu0 %v3415_v43  ;;  %v3480_v24 = vld [vmem:[#allocation12 + $0x684] ss:$16 sps:$4 sm:$0xff]   ;;  %v3475_v25 = vld [vmem:[#allocation12 + $0x480] ss:$16 sps:$4 sm:$0xff]  }
  0x7c   :  { %1731 = vmatpush1.bf16.msra.mxu1 %v3416_v44  ;;  %1691 = vmatprep.subr.bf16.mxu0 %v3417_v45  ;;  %v3478_v26 = vld [vmem:[#allocation12 + $0x680] ss:$16 sps:$4 sm:$0xff]   ;;  %v3483_v27 = vld [vmem:[#allocation12 + $0x4a4] ss:$16 sps:$4 sm:$0xff]  }
  0x7d   :  { %1732 = vmatprep.subr.bf16.mxu1 %v3419_v46  ;;  %v3486_v28 = vld [vmem:[#allocation12 + $0x6a4] ss:$16 sps:$4 sm:$0xff]   ;;  %v3481_v29 = vld [vmem:[#allocation12 + $0x4a0] ss:$16 sps:$4 sm:$0xff]  }
  0x7e   :  { %v3484_v30 = vld [vmem:[#allocation12 + $0x6a0] ss:$16 sps:$4 sm:$0xff]   ;;  %v3489_v31 = vld [vmem:[#allocation12 + $0x4c4] ss:$16 sps:$4 sm:$0xff]  }
  0x7f   :  { %1692 = vmatpush1.bf16.msra.mxu0 %v3421_v50  ;;  %v3492_v32 = vld [vmem:[#allocation12 + $0x6c4] ss:$16 sps:$4 sm:$0xff]   ;;  %v3487_v35 = vld [vmem:[#allocation12 + $0x4c0] ss:$16 sps:$4 sm:$0xff]  }
  0x80   :  { %1733 = vmatpush1.bf16.msra.mxu1 %v3422_v51  ;;  %1693 = vmatprep.subr.bf16.mxu0 %v3423_v53  ;;  %v4083_v33 = vld [vmem:[#allocation9 + $0x10] sm:$0xff] }
  0x81   :  { %1734 = vmatprep.subr.bf16.mxu1 %v3425_v54  ;;  %v3490_v36 = vld [vmem:[#allocation12 + $0x6c0] ss:$16 sps:$4 sm:$0xff]   ;;  %v4089_v37 = vcombine.high %v4083_v33, %v4083_v33  ;;  %v3495_v39 = vld [vmem:[#allocation12 + $0x4e4] ss:$16 sps:$4 sm:$0xff]  }
  0x82   :  { %v3498_v40 = vld [vmem:[#allocation12 + $0x6e4] ss:$16 sps:$4 sm:$0xff]   ;;  %v3493_v41 = vld [vmem:[#allocation12 + $0x4e0] ss:$16 sps:$4 sm:$0xff]  }
  0x83   :  { %1694 = vmatpush1.bf16.msra.mxu0 %v3427_v55  ;;  %v3496_v42 = vld [vmem:[#allocation12 + $0x6e0] ss:$16 sps:$4 sm:$0xff]   ;;  %v3501_v43 = vld [vmem:[#allocation12 + $0x504] ss:$16 sps:$4 sm:$0xff]  }
  0x84   :  { %1735 = vmatpush1.bf16.msra.mxu1 %v3428_v56  ;;  %1695 = vmatprep.subr.bf16.mxu0 %v3429_v57  ;;  %v3504_v44 = vld [vmem:[#allocation12 + $0x704] ss:$16 sps:$4 sm:$0xff]   ;;  %v3499_v45 = vld [vmem:[#allocation12 + $0x500] ss:$16 sps:$4 sm:$0xff]  }
  0x85   :  { %1736 = vmatprep.subr.bf16.mxu1 %v3431_v58  ;;  %v3502_v46 = vld [vmem:[#allocation12 + $0x700] ss:$16 sps:$4 sm:$0xff]   ;;  %v3507_v47 = vld [vmem:[#allocation12 + $0x524] ss:$16 sps:$4 sm:$0xff]  }
  0x86   :  { %v3510_v49 = vld [vmem:[#allocation12 + $0x724] ss:$16 sps:$4 sm:$0xff]   ;;  %v3505_v50 = vld [vmem:[#allocation12 + $0x520] ss:$16 sps:$4 sm:$0xff]  }
  0x87   :  { %1696 = vmatpush1.bf16.msra.mxu0 %v3433_v59  ;;  %v3508_v51 = vld [vmem:[#allocation12 + $0x720] ss:$16 sps:$4 sm:$0xff]   ;;  %v3513_v53 = vld [vmem:[#allocation12 + $0x544] ss:$16 sps:$4 sm:$0xff]  }
  0x88   :  { %1737 = vmatpush1.bf16.msra.mxu1 %v3434_v60  ;;  %1697 = vmatprep.subr.bf16.mxu0 %v3435_v61  ;;  %v3516_v54 = vld [vmem:[#allocation12 + $0x744] ss:$16 sps:$4 sm:$0xff]   ;;  %v3511_v55 = vld [vmem:[#allocation12 + $0x540] ss:$16 sps:$4 sm:$0xff]  }
  0x89   :  { %1738 = vmatprep.subr.bf16.mxu1 %v3437_v62  ;;  %v3514_v56 = vld [vmem:[#allocation12 + $0x740] ss:$16 sps:$4 sm:$0xff]   ;;  %v3519_v57 = vld [vmem:[#allocation12 + $0x564] ss:$16 sps:$4 sm:$0xff]  }
  0x8a   :  { %v3522_v58 = vld [vmem:[#allocation12 + $0x764] ss:$16 sps:$4 sm:$0xff]   ;;  %v3517_v59 = vld [vmem:[#allocation12 + $0x560] ss:$16 sps:$4 sm:$0xff]  }
  0x8b   :  { %1698 = vmatpush1.bf16.msra.mxu0 %v3439_v63  ;;  %v3520_v60 = vld [vmem:[#allocation12 + $0x760] ss:$16 sps:$4 sm:$0xff]   ;;  %v3525_v61 = vld [vmem:[#allocation12 + $0x584] ss:$16 sps:$4 sm:$0xff]  }
  0x8c   :  { %1739 = vmatpush1.bf16.msra.mxu1 %v3440_v0  ;;  %1699 = vmatprep.subr.bf16.mxu0 %v3441_v1  ;;  %v3528_v62 = vld [vmem:[#allocation12 + $0x784] ss:$16 sps:$4 sm:$0xff]   ;;  %v3523_v63 = vld [vmem:[#allocation12 + $0x580] ss:$16 sps:$4 sm:$0xff]  }
  0x8d   :  { %1740 = vmatprep.subr.bf16.mxu1 %v3443_v2  ;;  %v3526_v0 = vld [vmem:[#allocation12 + $0x780] ss:$16 sps:$4 sm:$0xff]   ;;  %v3531_v1 = vld [vmem:[#allocation12 + $0x5a4] ss:$16 sps:$4 sm:$0xff]  }
  0x8e   :  { %v3534_v2 = vld [vmem:[#allocation12 + $0x7a4] ss:$16 sps:$4 sm:$0xff]  }
  0x8f   :  { %1700 = vmatpush1.bf16.msra.mxu0 %v3445_v3  ;;  %v3529_v3 = vld [vmem:[#allocation12 + $0x5a0] ss:$16 sps:$4 sm:$0xff]  }
  0x90   :  { %1741 = vmatpush1.bf16.msra.mxu1 %v3446_v4  ;;  %1751 = vmatprep.subr.bf16.mxu0 %v3453_v5  ;;  %v3532_v4 = vld [vmem:[#allocation12 + $0x7a0] ss:$16 sps:$4 sm:$0xff]   ;;  %v3537_v5 = vld [vmem:[#allocation12 + $0x5c4] ss:$16 sps:$4 sm:$0xff]  }
  0x91   :  { %1792 = vmatprep.subr.bf16.mxu1 %v3456_v6  ;;  %v3540_v6 = vld [vmem:[#allocation12 + $0x7c4] ss:$16 sps:$4 sm:$0xff]  }
  0x92   :  { %1702 = vmatmul.mubr.bf16.vlgmr.msra.gmra.mrb[0].mxu0 %v4077_v7 }
  0x93   :  { %1743 = vmatmul.mubr.bf16.vlgmr.msra.gmra.mrb[0].mxu1 %v4079_v8  ;;  %1752 = vmatpush1.bf16.msra.mxu0 %v3451_v9  ;;  %v3535_v9 = vld [vmem:[#allocation12 + $0x5c0] ss:$16 sps:$4 sm:$0xff]  }
  0x94   :  { %1793 = vmatpush1.bf16.msra.mxu1 %v3454_v10  ;;  %1753 = vmatprep.subr.bf16.mxu0 %v3459_v11  ;;  %v3538_v10 = vld [vmem:[#allocation12 + $0x7c0] ss:$16 sps:$4 sm:$0xff]   ;;  %v3543_v11 = vld [vmem:[#allocation12 + $0x5e4] ss:$16 sps:$4 sm:$0xff]  }
  0x95   :  { %1794 = vmatprep.subr.bf16.mxu1 %v3462_v12  ;;  %1783 = vmatprep.mubr.bf16.mxu0 %v4089_v37  ;;  %v3546_v12 = vld [vmem:[#allocation12 + $0x7e4] ss:$16 sps:$4 sm:$0xff]  }
  0x96   :  { %1824 = vmatprep.mubr.bf16.mxu1 %v4093_v38 }
  0x97   :  { %1754 = vmatpush1.bf16.msra.mxu0 %v3457_v13  ;;  %v3541_v13 = vld [vmem:[#allocation12 + $0x5e0] ss:$16 sps:$4 sm:$0xff]  }
  0x98   :  { %1795 = vmatpush1.bf16.msra.mxu1 %v3460_v14  ;;  %1755 = vmatprep.subr.bf16.mxu0 %v3465_v15  ;;  %v3544_v14 = vld [vmem:[#allocation12 + $0x7e0] ss:$16 sps:$4 sm:$0xff]   ;;  %v3553_v15 = vld [vmem:[#allocation12 + $0xc] ss:$16 sps:$4 sm:$0xff]  }
  0x99   :  { %1796 = vmatprep.subr.bf16.mxu1 %v3468_v16  ;;  %v3556_v16 = vld [vmem:[#allocation12 + $0x20c] ss:$16 sps:$4 sm:$0xff]  }
  0x9b   :  { %1756 = vmatpush1.bf16.msra.mxu0 %v3463_v17  ;;  %v4099_v17 = vcombine.low %v4083_v33, %v4083_v33  ;;  %v3577_v33 = vld [vmem:[#allocation12 + $0x8c] ss:$16 sps:$4 sm:$0xff]  }
  0x9c   :  { %1797 = vmatpush1.bf16.msra.mxu1 %v3466_v18  ;;  %1757 = vmatprep.subr.bf16.mxu0 %v3471_v19  ;;  %v4103_v18 = vcombine.low %v4085_v34, %v4085_v34  ;;  %v3551_v19 = vld [vmem:[#allocation12 + $0x8] ss:$16 sps:$4 sm:$0xff]   ;;  %v3580_v34 = vld [vmem:[#allocation12 + $0x28c] ss:$16 sps:$4 sm:$0xff]  }
  0x9d   :  { %1798 = vmatprep.subr.bf16.mxu1 %v3474_v20  ;;  %v3554_v20 = vld [vmem:[#allocation12 + $0x208] ss:$16 sps:$4 sm:$0xff]  }
  0x9f   :  { %1758 = vmatpush1.bf16.msra.mxu0 %v3469_v21  ;;  %v3559_v21 = vld [vmem:[#allocation12 + $0x2c] ss:$16 sps:$4 sm:$0xff]  }
  0xa0   :  { %1799 = vmatpush1.bf16.msra.mxu1 %v3472_v22  ;;  %1759 = vmatprep.subr.bf16.mxu0 %v3477_v23  ;;  %v3562_v22 = vld [vmem:[#allocation12 + $0x22c] ss:$16 sps:$4 sm:$0xff]   ;;  %v3557_v23 = vld [vmem:[#allocation12 + $0x28] ss:$16 sps:$4 sm:$0xff]  }
  0xa1   :  { %1800 = vmatprep.subr.bf16.mxu1 %v3480_v24  ;;  %v3560_v24 = vld [vmem:[#allocation12 + $0x228] ss:$16 sps:$4 sm:$0xff]  }
  0xa3   :  { %1760 = vmatpush1.bf16.msra.mxu0 %v3475_v25  ;;  %v3565_v25 = vld [vmem:[#allocation12 + $0x4c] ss:$16 sps:$4 sm:$0xff]  }
  0xa4   :  { %1801 = vmatpush1.bf16.msra.mxu1 %v3478_v26  ;;  %1761 = vmatprep.subr.bf16.mxu0 %v3483_v27  ;;  %v3568_v26 = vld [vmem:[#allocation12 + $0x24c] ss:$16 sps:$4 sm:$0xff]   ;;  %v3563_v27 = vld [vmem:[#allocation12 + $0x48] ss:$16 sps:$4 sm:$0xff]  }
  0xa5   :  { %1802 = vmatprep.subr.bf16.mxu1 %v3486_v28  ;;  %v3566_v28 = vld [vmem:[#allocation12 + $0x248] ss:$16 sps:$4 sm:$0xff]  }
  0xa7   :  { %1762 = vmatpush1.bf16.msra.mxu0 %v3481_v29  ;;  %v3571_v29 = vld [vmem:[#allocation12 + $0x6c] ss:$16 sps:$4 sm:$0xff]  }
  0xa8   :  { %1803 = vmatpush1.bf16.msra.mxu1 %v3484_v30  ;;  %1763 = vmatprep.subr.bf16.mxu0 %v3489_v31  ;;  %v3574_v30 = vld [vmem:[#allocation12 + $0x26c] ss:$16 sps:$4 sm:$0xff]   ;;  %v3569_v31 = vld [vmem:[#allocation12 + $0x68] ss:$16 sps:$4 sm:$0xff]  }
  0xa9   :  { %1804 = vmatprep.subr.bf16.mxu1 %v3492_v32  ;;  %v3572_v32 = vld [vmem:[#allocation12 + $0x268] ss:$16 sps:$4 sm:$0xff]  }
  0xab   :  { %1764 = vmatpush1.bf16.msra.mxu0 %v3487_v35  ;;  %v3575_v35 = vld [vmem:[#allocation12 + $0x88] ss:$16 sps:$4 sm:$0xff]  }
  0xac   :  { %1805 = vmatpush1.bf16.msra.mxu1 %v3490_v36  ;;  %1765 = vmatprep.subr.bf16.mxu0 %v3495_v39  ;;  %v3586_v36 = vld [vmem:[#allocation12 + $0x2ac] ss:$16 sps:$4 sm:$0xff]   ;;  %v3581_v39 = vld [vmem:[#allocation12 + $0xa8] ss:$16 sps:$4 sm:$0xff]  }
  0xad   :  { %1806 = vmatprep.subr.bf16.mxu1 %v3498_v40  ;;  %v3584_v40 = vld [vmem:[#allocation12 + $0x2a8] ss:$16 sps:$4 sm:$0xff]  }
  0xaf   :  { %1766 = vmatpush1.bf16.msra.mxu0 %v3493_v41  ;;  %v3589_v41 = vld [vmem:[#allocation12 + $0xcc] ss:$16 sps:$4 sm:$0xff]  }
  0xb0   :  { %1807 = vmatpush1.bf16.msra.mxu1 %v3496_v42  ;;  %1767 = vmatprep.subr.bf16.mxu0 %v3501_v43  ;;  %v3592_v42 = vld [vmem:[#allocation12 + $0x2cc] ss:$16 sps:$4 sm:$0xff]   ;;  %v3587_v43 = vld [vmem:[#allocation12 + $0xc8] ss:$16 sps:$4 sm:$0xff]  }
  0xb1   :  { %1808 = vmatprep.subr.bf16.mxu1 %v3504_v44  ;;  %v3590_v44 = vld [vmem:[#allocation12 + $0x2c8] ss:$16 sps:$4 sm:$0xff]  }
  0xb3   :  { %1768 = vmatpush1.bf16.msra.mxu0 %v3499_v45  ;;  %v3595_v45 = vld [vmem:[#allocation12 + $0xec] ss:$16 sps:$4 sm:$0xff]  }
  0xb4   :  { %1809 = vmatpush1.bf16.msra.mxu1 %v3502_v46  ;;  %1769 = vmatprep.subr.bf16.mxu0 %v3507_v47  ;;  %v3598_v46 = vld [vmem:[#allocation12 + $0x2ec] ss:$16 sps:$4 sm:$0xff]   ;;  %v3593_v47 = vld [vmem:[#allocation12 + $0xe8] ss:$16 sps:$4 sm:$0xff]  }
  0xb5   :  { %1810 = vmatprep.subr.bf16.mxu1 %v3510_v49  ;;  %v3596_v49 = vld [vmem:[#allocation12 + $0x2e8] ss:$16 sps:$4 sm:$0xff]  }
  0xb7   :  { %1770 = vmatpush1.bf16.msra.mxu0 %v3505_v50  ;;  %v3601_v50 = vld [vmem:[#allocation12 + $0x10c] ss:$16 sps:$4 sm:$0xff]  }
  0xb8   :  { %1811 = vmatpush1.bf16.msra.mxu1 %v3508_v51  ;;  %1771 = vmatprep.subr.bf16.mxu0 %v3513_v53  ;;  %v3604_v51 = vld [vmem:[#allocation12 + $0x30c] ss:$16 sps:$4 sm:$0xff]   ;;  %v3599_v53 = vld [vmem:[#allocation12 + $0x108] ss:$16 sps:$4 sm:$0xff]  }
  0xb9   :  { %1812 = vmatprep.subr.bf16.mxu1 %v3516_v54  ;;  %v3602_v54 = vld [vmem:[#allocation12 + $0x308] ss:$16 sps:$4 sm:$0xff]  }
  0xbb   :  { %1772 = vmatpush1.bf16.msra.mxu0 %v3511_v55  ;;  %v3607_v55 = vld [vmem:[#allocation12 + $0x12c] ss:$16 sps:$4 sm:$0xff]  }
  0xbc   :  { %1813 = vmatpush1.bf16.msra.mxu1 %v3514_v56  ;;  %1773 = vmatprep.subr.bf16.mxu0 %v3519_v57  ;;  %v3610_v56 = vld [vmem:[#allocation12 + $0x32c] ss:$16 sps:$4 sm:$0xff]   ;;  %v3605_v57 = vld [vmem:[#allocation12 + $0x128] ss:$16 sps:$4 sm:$0xff]  }
  0xbd   :  { %1814 = vmatprep.subr.bf16.mxu1 %v3522_v58  ;;  %v3608_v58 = vld [vmem:[#allocation12 + $0x328] ss:$16 sps:$4 sm:$0xff]  }
  0xbf   :  { %1774 = vmatpush1.bf16.msra.mxu0 %v3517_v59  ;;  %v3613_v59 = vld [vmem:[#allocation12 + $0x14c] ss:$16 sps:$4 sm:$0xff]  }
  0xc0   :  { %1815 = vmatpush1.bf16.msra.mxu1 %v3520_v60  ;;  %1775 = vmatprep.subr.bf16.mxu0 %v3525_v61  ;;  %v3616_v60 = vld [vmem:[#allocation12 + $0x34c] ss:$16 sps:$4 sm:$0xff]   ;;  %v3611_v61 = vld [vmem:[#allocation12 + $0x148] ss:$16 sps:$4 sm:$0xff]  }
  0xc1   :  { %1816 = vmatprep.subr.bf16.mxu1 %v3528_v62  ;;  %v3614_v62 = vld [vmem:[#allocation12 + $0x348] ss:$16 sps:$4 sm:$0xff]  }
  0xc3   :  { %1776 = vmatpush1.bf16.msra.mxu0 %v3523_v63  ;;  %v3619_v63 = vld [vmem:[#allocation12 + $0x16c] ss:$16 sps:$4 sm:$0xff]  }
  0xc4   :  { %1817 = vmatpush1.bf16.msra.mxu1 %v3526_v0  ;;  %1777 = vmatprep.subr.bf16.mxu0 %v3531_v1  ;;  %v3622_v0 = vld [vmem:[#allocation12 + $0x36c] ss:$16 sps:$4 sm:$0xff]   ;;  %v3617_v1 = vld [vmem:[#allocation12 + $0x168] ss:$16 sps:$4 sm:$0xff]  }
  0xc5   :  { %1818 = vmatprep.subr.bf16.mxu1 %v3534_v2  ;;  %v3620_v2 = vld [vmem:[#allocation12 + $0x368] ss:$16 sps:$4 sm:$0xff]  }
  0xc7   :  { %1778 = vmatpush1.bf16.msra.mxu0 %v3529_v3  ;;  %v3625_v3 = vld [vmem:[#allocation12 + $0x18c] ss:$16 sps:$4 sm:$0xff]  }
  0xc8   :  { %1819 = vmatpush1.bf16.msra.mxu1 %v3532_v4  ;;  %1779 = vmatprep.subr.bf16.mxu0 %v3537_v5  ;;  %v3628_v4 = vld [vmem:[#allocation12 + $0x38c] ss:$16 sps:$4 sm:$0xff]   ;;  %v3623_v5 = vld [vmem:[#allocation12 + $0x188] ss:$16 sps:$4 sm:$0xff]  }
  0xc9   :  { %1820 = vmatprep.subr.bf16.mxu1 %v3540_v6  ;;  %v3626_v6 = vld [vmem:[#allocation12 + $0x388] ss:$16 sps:$4 sm:$0xff]  }
  0xcb   :  { %1780 = vmatpush1.bf16.msra.mxu0 %v3535_v9  ;;  %v3631_v9 = vld [vmem:[#allocation12 + $0x1ac] ss:$16 sps:$4 sm:$0xff]  }
  0xcc   :  { %1821 = vmatpush1.bf16.msra.mxu1 %v3538_v10  ;;  %1781 = vmatprep.subr.bf16.mxu0 %v3543_v11  ;;  %v3634_v10 = vld [vmem:[#allocation12 + $0x3ac] ss:$16 sps:$4 sm:$0xff]   ;;  %v3629_v11 = vld [vmem:[#allocation12 + $0x1a8] ss:$16 sps:$4 sm:$0xff]  }
  0xcd   :  { %1822 = vmatprep.subr.bf16.mxu1 %v3546_v12  ;;  %v3632_v12 = vld [vmem:[#allocation12 + $0x3a8] ss:$16 sps:$4 sm:$0xff]  }
  0xcf   :  { %1782 = vmatpush1.bf16.msra.mxu0 %v3541_v13  ;;  %v3637_v13 = vld [vmem:[#allocation12 + $0x1cc] ss:$16 sps:$4 sm:$0xff]  }
  0xd0   :  { %1823 = vmatpush1.bf16.msra.mxu1 %v3544_v14  ;;  %1833 = vmatprep.subr.bf16.mxu0 %v3553_v15  ;;  %v3640_v14 = vld [vmem:[#allocation12 + $0x3cc] ss:$16 sps:$4 sm:$0xff]   ;;  %v3635_v15 = vld [vmem:[#allocation12 + $0x1c8] ss:$16 sps:$4 sm:$0xff]  }
  0xd1   :  { %1874 = vmatprep.subr.bf16.mxu1 %v3556_v16  ;;  %v3638_v16 = vld [vmem:[#allocation12 + $0x3c8] ss:$16 sps:$4 sm:$0xff]  }
  0xd2   :  { %1784 = vmatmul.mubr.bf16.vlgmr.msra.gmra.mrb[4].mxu0 %v4099_v17 }
  0xd3   :  { %1825 = vmatmul.mubr.bf16.vlgmr.msra.gmra.mrb[4].mxu1 %v4103_v18  ;;  %1834 = vmatpush1.bf16.msra.mxu0 %v3551_v19  ;;  %v3643_v19 = vld [vmem:[#allocation12 + $0x1ec] ss:$16 sps:$4 sm:$0xff]  }
  0xd4   :  { %1875 = vmatpush1.bf16.msra.mxu1 %v3554_v20  ;;  %1835 = vmatprep.subr.bf16.mxu0 %v3559_v21  ;;  %v3646_v20 = vld [vmem:[#allocation12 + $0x3ec] ss:$16 sps:$4 sm:$0xff]   ;;  %v3641_v21 = vld [vmem:[#allocation12 + $0x1e8] ss:$16 sps:$4 sm:$0xff]  }
  0xd5   :  { %1876 = vmatprep.subr.bf16.mxu1 %v3562_v22  ;;  %1865 = vmatprep.mubr.bf16.mxu0 %v4071_v48  ;;  %v3578_v48 = vld [vmem:[#allocation12 + $0x288] ss:$16 sps:$4 sm:$0xff]  }
  0xd6   :  { %1906 = vmatprep.mubr.bf16.mxu1 %v4073_v52  ;;  %v3583_v52 = vld [vmem:[#allocation12 + $0xac] ss:$16 sps:$4 sm:$0xff]   ;;  %v3644_v22 = vld [vmem:[#allocation12 + $0x3e8] ss:$16 sps:$4 sm:$0xff]  }
  0xd7   :  { %1836 = vmatpush1.bf16.msra.mxu0 %v3557_v23  ;;  %v3649_v23 = vld [vmem:[#allocation12 + $0x40c] ss:$16 sps:$4 sm:$0xff]  }
  0xd8   :  { %1877 = vmatpush1.bf16.msra.mxu1 %v3560_v24  ;;  %1837 = vmatprep.subr.bf16.mxu0 %v3565_v25  ;;  %v3652_v24 = vld [vmem:[#allocation12 + $0x60c] ss:$16 sps:$4 sm:$0xff]   ;;  %v3647_v25 = vld [vmem:[#allocation12 + $0x408] ss:$16 sps:$4 sm:$0xff]  }
  0xd9   :  { %1878 = vmatprep.subr.bf16.mxu1 %v3568_v26  ;;  %v3650_v26 = vld [vmem:[#allocation12 + $0x608] ss:$16 sps:$4 sm:$0xff]  }
  0xdb   :  { %1838 = vmatpush1.bf16.msra.mxu0 %v3563_v27  ;;  %v3655_v27 = vld [vmem:[#allocation12 + $0x42c] ss:$16 sps:$4 sm:$0xff]  }
  0xdc   :  { %1879 = vmatpush1.bf16.msra.mxu1 %v3566_v28  ;;  %1839 = vmatprep.subr.bf16.mxu0 %v3571_v29  ;;  %v3658_v28 = vld [vmem:[#allocation12 + $0x62c] ss:$16 sps:$4 sm:$0xff]   ;;  %v3653_v29 = vld [vmem:[#allocation12 + $0x428] ss:$16 sps:$4 sm:$0xff]  }
  0xdd   :  { %1880 = vmatprep.subr.bf16.mxu1 %v3574_v30  ;;  %v3656_v30 = vld [vmem:[#allocation12 + $0x628] ss:$16 sps:$4 sm:$0xff]  }
  0xdf   :  { %1840 = vmatpush1.bf16.msra.mxu0 %v3569_v31  ;;  %v3661_v31 = vld [vmem:[#allocation12 + $0x44c] ss:$16 sps:$4 sm:$0xff]  }
  0xe0   :  { %1881 = vmatpush1.bf16.msra.mxu1 %v3572_v32  ;;  %1841 = vmatprep.subr.bf16.mxu0 %v3577_v33  ;;  %v3664_v32 = vld [vmem:[#allocation12 + $0x64c] ss:$16 sps:$4 sm:$0xff]   ;;  %v3659_v33 = vld [vmem:[#allocation12 + $0x448] ss:$16 sps:$4 sm:$0xff]  }
  0xe1   :  { %1882 = vmatprep.subr.bf16.mxu1 %v3580_v34  ;;  %v3662_v34 = vld [vmem:[#allocation12 + $0x648] ss:$16 sps:$4 sm:$0xff]  }
  0xe3   :  { %1842 = vmatpush1.bf16.msra.mxu0 %v3575_v35  ;;  %v3667_v35 = vld [vmem:[#allocation12 + $0x46c] ss:$16 sps:$4 sm:$0xff]  }
  0xe4   :  { %1883 = vmatpush1.bf16.msra.mxu1 %v3578_v48  ;;  %1843 = vmatprep.subr.bf16.mxu0 %v3583_v52  ;;  %v3668_v48 = vld [vmem:[#allocation12 + $0x668] ss:$16 sps:$4 sm:$0xff]   ;;  %v3673_v52 = vld [vmem:[#allocation12 + $0x48c] ss:$16 sps:$4 sm:$0xff]  }
  0xe5   :  { %1884 = vmatprep.subr.bf16.mxu1 %v3586_v36  ;;  %v3676_v36 = vld [vmem:[#allocation12 + $0x68c] ss:$16 sps:$4 sm:$0xff]  }
  0xe7   :  { %1844 = vmatpush1.bf16.msra.mxu0 %v3581_v39  ;;  %v3679_v39 = vld [vmem:[#allocation12 + $0x4ac] ss:$16 sps:$4 sm:$0xff]  }
  0xe8   :  { %1885 = vmatpush1.bf16.msra.mxu1 %v3584_v40  ;;  %1845 = vmatprep.subr.bf16.mxu0 %v3589_v41  ;;  %v3682_v40 = vld [vmem:[#allocation12 + $0x6ac] ss:$16 sps:$4 sm:$0xff]   ;;  %v3677_v41 = vld [vmem:[#allocation12 + $0x4a8] ss:$16 sps:$4 sm:$0xff]  }
  0xe9   :  { %1886 = vmatprep.subr.bf16.mxu1 %v3592_v42  ;;  %v3680_v42 = vld [vmem:[#allocation12 + $0x6a8] ss:$16 sps:$4 sm:$0xff]  }
  0xeb   :  { %1846 = vmatpush1.bf16.msra.mxu0 %v3587_v43  ;;  %v3685_v43 = vld [vmem:[#allocation12 + $0x4cc] ss:$16 sps:$4 sm:$0xff]  }
  0xec   :  { %1887 = vmatpush1.bf16.msra.mxu1 %v3590_v44  ;;  %1847 = vmatprep.subr.bf16.mxu0 %v3595_v45  ;;  %v3688_v44 = vld [vmem:[#allocation12 + $0x6cc] ss:$16 sps:$4 sm:$0xff]   ;;  %v3683_v45 = vld [vmem:[#allocation12 + $0x4c8] ss:$16 sps:$4 sm:$0xff]  }
  0xed   :  { %1888 = vmatprep.subr.bf16.mxu1 %v3598_v46  ;;  %v3686_v46 = vld [vmem:[#allocation12 + $0x6c8] ss:$16 sps:$4 sm:$0xff]  }
  0xef   :  { %1848 = vmatpush1.bf16.msra.mxu0 %v3593_v47  ;;  %v3691_v47 = vld [vmem:[#allocation12 + $0x4ec] ss:$16 sps:$4 sm:$0xff]  }
  0xf0   :  { %1889 = vmatpush1.bf16.msra.mxu1 %v3596_v49  ;;  %1849 = vmatprep.subr.bf16.mxu0 %v3601_v50  ;;  %v3694_v49 = vld [vmem:[#allocation12 + $0x6ec] ss:$16 sps:$4 sm:$0xff]   ;;  %v3689_v50 = vld [vmem:[#allocation12 + $0x4e8] ss:$16 sps:$4 sm:$0xff]  }
  0xf1   :  { %1890 = vmatprep.subr.bf16.mxu1 %v3604_v51  ;;  %v3692_v51 = vld [vmem:[#allocation12 + $0x6e8] ss:$16 sps:$4 sm:$0xff]  }
  0xf3   :  { %1850 = vmatpush1.bf16.msra.mxu0 %v3599_v53  ;;  %v3697_v53 = vld [vmem:[#allocation12 + $0x50c] ss:$16 sps:$4 sm:$0xff]  }
  0xf4   :  { %1891 = vmatpush1.bf16.msra.mxu1 %v3602_v54  ;;  %1851 = vmatprep.subr.bf16.mxu0 %v3607_v55  ;;  %v3700_v54 = vld [vmem:[#allocation12 + $0x70c] ss:$16 sps:$4 sm:$0xff]   ;;  %v3695_v55 = vld [vmem:[#allocation12 + $0x508] ss:$16 sps:$4 sm:$0xff]  }
  0xf5   :  { %1892 = vmatprep.subr.bf16.mxu1 %v3610_v56  ;;  %v3698_v56 = vld [vmem:[#allocation12 + $0x708] ss:$16 sps:$4 sm:$0xff]  }
  0xf7   :  { %1852 = vmatpush1.bf16.msra.mxu0 %v3605_v57  ;;  %v3703_v57 = vld [vmem:[#allocation12 + $0x52c] ss:$16 sps:$4 sm:$0xff]  }
  0xf8   :  { %1893 = vmatpush1.bf16.msra.mxu1 %v3608_v58  ;;  %1853 = vmatprep.subr.bf16.mxu0 %v3613_v59  ;;  %v3706_v58 = vld [vmem:[#allocation12 + $0x72c] ss:$16 sps:$4 sm:$0xff]   ;;  %v3701_v59 = vld [vmem:[#allocation12 + $0x528] ss:$16 sps:$4 sm:$0xff]  }
  0xf9   :  { %1894 = vmatprep.subr.bf16.mxu1 %v3616_v60  ;;  %v3704_v60 = vld [vmem:[#allocation12 + $0x728] ss:$16 sps:$4 sm:$0xff]  }
  0xfb   :  { %1854 = vmatpush1.bf16.msra.mxu0 %v3611_v61  ;;  %v3709_v61 = vld [vmem:[#allocation12 + $0x54c] ss:$16 sps:$4 sm:$0xff]  }
  0xfc   :  { %1895 = vmatpush1.bf16.msra.mxu1 %v3614_v62  ;;  %1855 = vmatprep.subr.bf16.mxu0 %v3619_v63  ;;  %v3712_v62 = vld [vmem:[#allocation12 + $0x74c] ss:$16 sps:$4 sm:$0xff]   ;;  %v3707_v63 = vld [vmem:[#allocation12 + $0x548] ss:$16 sps:$4 sm:$0xff]  }
  0xfd   :  { %1896 = vmatprep.subr.bf16.mxu1 %v3622_v0  ;;  %v3710_v0 = vld [vmem:[#allocation12 + $0x748] ss:$16 sps:$4 sm:$0xff]  }
  0xff   :  { %1856 = vmatpush1.bf16.msra.mxu0 %v3617_v1  ;;  %v3715_v1 = vld [vmem:[#allocation12 + $0x56c] ss:$16 sps:$4 sm:$0xff]  }
 0x100   :  { %1897 = vmatpush1.bf16.msra.mxu1 %v3620_v2  ;;  %1857 = vmatprep.subr.bf16.mxu0 %v3625_v3  ;;  %v3718_v2 = vld [vmem:[#allocation12 + $0x76c] ss:$16 sps:$4 sm:$0xff]   ;;  %v3713_v3 = vld [vmem:[#allocation12 + $0x568] ss:$16 sps:$4 sm:$0xff]  }
 0x101   :  { %1898 = vmatprep.subr.bf16.mxu1 %v3628_v4  ;;  %v3716_v4 = vld [vmem:[#allocation12 + $0x768] ss:$16 sps:$4 sm:$0xff]  }
 0x103   :  { %1858 = vmatpush1.bf16.msra.mxu0 %v3623_v5  ;;  %v3721_v5 = vld [vmem:[#allocation12 + $0x58c] ss:$16 sps:$4 sm:$0xff]  }
 0x104   :  { %1899 = vmatpush1.bf16.msra.mxu1 %v3626_v6  ;;  %1859 = vmatprep.subr.bf16.mxu0 %v3631_v9  ;;  %v3724_v6 = vld [vmem:[#allocation12 + $0x78c] ss:$16 sps:$4 sm:$0xff]   ;;  %v3719_v9 = vld [vmem:[#allocation12 + $0x588] ss:$16 sps:$4 sm:$0xff]  }
 0x105   :  { %1900 = vmatprep.subr.bf16.mxu1 %v3634_v10  ;;  %v3722_v10 = vld [vmem:[#allocation12 + $0x788] ss:$16 sps:$4 sm:$0xff]  }
 0x107   :  { %1860 = vmatpush1.bf16.msra.mxu0 %v3629_v11  ;;  %v3727_v11 = vld [vmem:[#allocation12 + $0x5ac] ss:$16 sps:$4 sm:$0xff]  }
 0x108   :  { %1901 = vmatpush1.bf16.msra.mxu1 %v3632_v12  ;;  %1861 = vmatprep.subr.bf16.mxu0 %v3637_v13  ;;  %v3730_v12 = vld [vmem:[#allocation12 + $0x7ac] ss:$16 sps:$4 sm:$0xff]   ;;  %v3725_v13 = vld [vmem:[#allocation12 + $0x5a8] ss:$16 sps:$4 sm:$0xff]  }
 0x109   :  { %1902 = vmatprep.subr.bf16.mxu1 %v3640_v14  ;;  %v3728_v14 = vld [vmem:[#allocation12 + $0x7a8] ss:$16 sps:$4 sm:$0xff]  }
 0x10b   :  { %1862 = vmatpush1.bf16.msra.mxu0 %v3635_v15  ;;  %v3733_v15 = vld [vmem:[#allocation12 + $0x5cc] ss:$16 sps:$4 sm:$0xff]  }
 0x10c   :  { %1903 = vmatpush1.bf16.msra.mxu1 %v3638_v16  ;;  %1863 = vmatprep.subr.bf16.mxu0 %v3643_v19  ;;  %v3736_v16 = vld [vmem:[#allocation12 + $0x7cc] ss:$16 sps:$4 sm:$0xff]   ;;  %v3731_v19 = vld [vmem:[#allocation12 + $0x5c8] ss:$16 sps:$4 sm:$0xff]  }
 0x10d   :  { %1904 = vmatprep.subr.bf16.mxu1 %v3646_v20  ;;  %v3734_v20 = vld [vmem:[#allocation12 + $0x7c8] ss:$16 sps:$4 sm:$0xff]  }
 0x10f   :  { %1864 = vmatpush1.bf16.msra.mxu0 %v3641_v21  ;;  %v3739_v21 = vld [vmem:[#allocation12 + $0x5ec] ss:$16 sps:$4 sm:$0xff]  }
 0x110   :  { %1905 = vmatpush1.bf16.msra.mxu1 %v3644_v22  ;;  %1915 = vmatprep.subr.bf16.mxu0 %v3649_v23  ;;  %v3742_v22 = vld [vmem:[#allocation12 + $0x7ec] ss:$16 sps:$4 sm:$0xff]   ;;  %v3737_v23 = vld [vmem:[#allocation12 + $0x5e8] ss:$16 sps:$4 sm:$0xff]  }
 0x111   :  { %1956 = vmatprep.subr.bf16.mxu1 %v3652_v24  ;;  %v3740_v24 = vld [vmem:[#allocation12 + $0x7e8] ss:$16 sps:$4 sm:$0xff]  }
 0x112   :  { %1866 = vmatmul.mubr.bf16.vlgmr.msra.gmra.mrb[8].mxu0 %v4077_v7  ;;  %v3670_v7 = vld [vmem:[#allocation12 + $0x66c] ss:$16 sps:$4 sm:$0xff]  }
 0x113   :  { %1907 = vmatmul.mubr.bf16.vlgmr.msra.gmra.mrb[8].mxu1 %v4079_v8  ;;  %1916 = vmatpush1.bf16.msra.mxu0 %v3647_v25  ;;  %v3665_v8 = vld [vmem:[#allocation12 + $0x468] ss:$16 sps:$4 sm:$0xff]   ;;  %v3743_v25 = vld [vmem:[#allocation14 + $0x40] sm:$0xff]  }
 0x114   :  { %1957 = vmatpush1.bf16.msra.mxu1 %v3650_v26  ;;  %1917 = vmatprep.subr.bf16.mxu0 %v3655_v27  ;;  %v3744_v26 = vld [vmem:[#allocation14] sm:$0xff]   ;;  %v3745_v27 = vld [vmem:[#allocation14 + $0x48] sm:$0xff]  }
 0x115   :  { %1958 = vmatprep.subr.bf16.mxu1 %v3658_v28  ;;  %1947 = vmatprep.mubr.bf16.mxu0 %v4089_v37  ;;  %v3671_v37 = vld [vmem:[#allocation12 + $0x488] ss:$16 sps:$4 sm:$0xff]  }
 0x116   :  { %1988 = vmatprep.mubr.bf16.mxu1 %v4093_v38  ;;  %v3674_v38 = vld [vmem:[#allocation12 + $0x688] ss:$16 sps:$4 sm:$0xff]  }
 0x117   :  { %1918 = vmatpush1.bf16.msra.mxu0 %v3653_v29  ;;  %v3746_v28 = vld [vmem:[#allocation14 + $0x8] sm:$0xff]   ;;  %v3747_v29 = vld [vmem:[#allocation14 + $0x50] sm:$0xff]  }
 0x118   :  { %1959 = vmatpush1.bf16.msra.mxu1 %v3656_v30  ;;  %1919 = vmatprep.subr.bf16.mxu0 %v3661_v31  ;;  %v3748_v30 = vld [vmem:[#allocation14 + $0x10] sm:$0xff]   ;;  %v3749_v31 = vld [vmem:[#allocation14 + $0x58] sm:$0xff]  }
 0x119   :  { %1960 = vmatprep.subr.bf16.mxu1 %v3664_v32  ;;  %v3750_v32 = vld [vmem:[#allocation14 + $0x18] sm:$0xff]  }
 0x11b   :  { %1920 = vmatpush1.bf16.msra.mxu0 %v3659_v33  ;;  %v3751_v33 = vld [vmem:[#allocation14 + $0x60] sm:$0xff]  }
 0x11c   :  { %1961 = vmatpush1.bf16.msra.mxu1 %v3662_v34  ;;  %1921 = vmatprep.subr.bf16.mxu0 %v3667_v35  ;;  %v3752_v34 = vld [vmem:[#allocation14 + $0x20] sm:$0xff]   ;;  %v3753_v35 = vld [vmem:[#allocation14 + $0x68] sm:$0xff]  }
 0x11d   :  { %1962 = vmatprep.subr.bf16.mxu1 %v3670_v7 }
 0x11f   :  { %1922 = vmatpush1.bf16.msra.mxu0 %v3665_v8 }
 0x120   :  { %1963 = vmatpush1.bf16.msra.mxu1 %v3668_v48  ;;  %1923 = vmatprep.subr.bf16.mxu0 %v3673_v52 }
 0x121   :  { %1964 = vmatprep.subr.bf16.mxu1 %v3676_v36 }
 0x123   :  { %1924 = vmatpush1.bf16.msra.mxu0 %v3671_v37 }
 0x124   :  { %1965 = vmatpush1.bf16.msra.mxu1 %v3674_v38  ;;  %1925 = vmatprep.subr.bf16.mxu0 %v3679_v39 }
 0x125   :  { %1966 = vmatprep.subr.bf16.mxu1 %v3682_v40  ;;  %v3756_v40 = vld [vmem:[#allocation14 + $0x30] sm:$0xff]  }
 0x127   :  { %1926 = vmatpush1.bf16.msra.mxu0 %v3677_v41  ;;  %v3757_v41 = vld [vmem:[#allocation14 + $0x78] sm:$0xff]  }
 0x128   :  { %1967 = vmatpush1.bf16.msra.mxu1 %v3680_v42  ;;  %1927 = vmatprep.subr.bf16.mxu0 %v3685_v43 }
 0x129   :  { %1968 = vmatprep.subr.bf16.mxu1 %v3688_v44  ;;  %v3759_v44 = vld [vmem:[#allocation14 + $0xc0] sm:$0xff]  }
 0x12b   :  { %1928 = vmatpush1.bf16.msra.mxu0 %v3683_v45  ;;  %v3760_v45 = vld [vmem:[#allocation14 + $0x80] sm:$0xff]  }
 0x12c   :  { %1969 = vmatpush1.bf16.msra.mxu1 %v3686_v46  ;;  %1929 = vmatprep.subr.bf16.mxu0 %v3691_v47  ;;  %v3761_v46 = vld [vmem:[#allocation14 + $0xc8] sm:$0xff]   ;;  %v3758_v47 = vld [vmem:[#allocation14 + $0x38] sm:$0xff]  }
 0x12d   :  { %1970 = vmatprep.subr.bf16.mxu1 %v3694_v49  ;;  %v3762_v49 = vld [vmem:[#allocation14 + $0x88] sm:$0xff]  }
 0x12f   :  { %1930 = vmatpush1.bf16.msra.mxu0 %v3689_v50  ;;  %v3763_v50 = vld [vmem:[#allocation14 + $0xd0] sm:$0xff]  }
 0x130   :  { %1971 = vmatpush1.bf16.msra.mxu1 %v3692_v51  ;;  %1931 = vmatprep.subr.bf16.mxu0 %v3697_v53  ;;  %v3764_v51 = vld [vmem:[#allocation14 + $0x90] sm:$0xff]   ;;  %v3765_v53 = vld [vmem:[#allocation14 + $0xd8] sm:$0xff]  }
 0x131   :  { %1972 = vmatprep.subr.bf16.mxu1 %v3700_v54  ;;  %v3766_v54 = vld [vmem:[#allocation14 + $0x98] sm:$0xff]  }
 0x133   :  { %1932 = vmatpush1.bf16.msra.mxu0 %v3695_v55  ;;  %v3767_v55 = vld [vmem:[#allocation14 + $0xe0] sm:$0xff]  }
 0x134   :  { %1973 = vmatpush1.bf16.msra.mxu1 %v3698_v56  ;;  %1933 = vmatprep.subr.bf16.mxu0 %v3703_v57  ;;  %v3768_v56 = vld [vmem:[#allocation14 + $0xa0] sm:$0xff]   ;;  %v3769_v57 = vld [vmem:[#allocation14 + $0xe8] sm:$0xff]  }
 0x135   :  { %1974 = vmatprep.subr.bf16.mxu1 %v3706_v58  ;;  %v2014_v58 = vlaneseq }
 0x137   :  { %1934 = vmatpush1.bf16.msra.mxu0 %v3701_v59  ;;  %v4116_v59 = vshrl.u32 %v2014_v58, 7 }
 0x138   :  { %1975 = vmatpush1.bf16.msra.mxu1 %v3704_v60  ;;  %1935 = vmatprep.subr.bf16.mxu0 %v3709_v61  ;;  %v2012_v61 = vld [vmem:[%s4209_s6] sm:$0xf] }
 0x139   :  { %1976 = vmatprep.subr.bf16.mxu1 %v3712_v62  ;;  %v2016_v60 = vsub.s32 0, %v4116_v59  ;;  %v2020_v62 = vsub.s32 1, %v4116_v59 }
 0x13b   :  { %1936 = vmatpush1.bf16.msra.mxu0 %v3707_v63  ;;  %v3770_v63 = vld [vmem:[#allocation14 + $0xa8] sm:$0xff]  }
 0x13c   :  { %1977 = vmatpush1.bf16.msra.mxu1 %v3710_v0  ;;  %1937 = vmatprep.subr.bf16.mxu0 %v3715_v1 }
 0x13d   :  { %1978 = vmatprep.subr.bf16.mxu1 %v3718_v2 }
 0x13f   :  { %1938 = vmatpush1.bf16.msra.mxu0 %v3713_v3  ;;  %v2017_v3 = vrot.slane %v2012_v61, %v2016_v60 }
 0x140   :  { %1979 = vmatpush1.bf16.msra.mxu1 %v3716_v4  ;;  %1939 = vmatprep.subr.bf16.mxu0 %v3721_v5 }
 0x141   :  { %1980 = vmatprep.subr.bf16.mxu1 %v3724_v6  ;;  %v3771_v6 = vld [vmem:[#allocation14 + $0xf0] sm:$0xff]  }
 0x143   :  { %1940 = vmatpush1.bf16.msra.mxu0 %v3719_v9 }
 0x144   :  { %1981 = vmatpush1.bf16.msra.mxu1 %v3722_v10  ;;  %1941 = vmatprep.subr.bf16.mxu0 %v3727_v11  ;;  %v2021_v10 = vrot.slane %v2012_v61, %v2020_v62 }
 0x145   :  { %1982 = vmatprep.subr.bf16.mxu1 %v3730_v12 }
 0x147   :  { %1942 = vmatpush1.bf16.msra.mxu0 %v3725_v13  ;;  %v3772_v13 = vld [vmem:[#allocation14 + $0xb0] sm:$0xff]  }
 0x148   :  { %1983 = vmatpush1.bf16.msra.mxu1 %v3728_v14  ;;  %1943 = vmatprep.subr.bf16.mxu0 %v3733_v15 }
 0x149   :  { %1984 = vmatprep.subr.bf16.mxu1 %v3736_v16 }
 0x14b   :  { %1944 = vmatpush1.bf16.msra.mxu0 %v3731_v19 }
 0x14c   :  { %1985 = vmatpush1.bf16.msra.mxu1 %v3734_v20  ;;  %1945 = vmatprep.subr.bf16.mxu0 %v3739_v21  ;;  %v3773_v21 = vld [vmem:[#allocation14 + $0xf8] sm:$0xff]  }
 0x14d   :  { %1986 = vmatprep.subr.bf16.mxu1 %v3742_v22 }
 0x14f   :  { %1946 = vmatpush1.bf16.msra.mxu0 %v3737_v23  ;;  %v3774_v23 = vld [vmem:[#allocation14 + $0xb8] sm:$0xff]  }
 0x150   :  { %1987 = vmatpush1.bf16.msra.mxu1 %v3740_v24  ;;  %3240 = vmatprep.subr.bf16.mxu0 %v3743_v25 }
 0x151   :  { %3262 = vmatprep.subr.bf16.mxu1 %v3759_v44 }
 0x152   :  { %1948 = vmatmul.mubr.bf16.vlgmr.msra.gmra.mrb[12].mxu0 %v4099_v17  ;;  %v3754_v17 = vld [vmem:[#allocation14 + $0x28] sm:$0xff]  }
 0x153   :  { %1989 = vmatmul.mubr.bf16.vlgmr.msra.gmra.mrb[12].mxu1 %v4103_v18  ;;  %3241 = vmatpush3.bf16.msra.mxu0 %v3744_v26  ;;  %v3755_v18 = vld [vmem:[#allocation14 + $0x70] sm:$0xff]  }
 0x154   :  { %3242 = vmatprep.subr.bf16.mxu0 %v3745_v27  ;;  %3263 = vmatpush3.bf16.msra.mxu1 %v3760_v45 }
 0x155   :  { %3264 = vmatprep.subr.bf16.mxu1 %v3761_v46 }
 0x157   :  { %3243 = vmatpush3.bf16.msra.mxu0 %v3746_v28 }
 0x158   :  { %3244 = vmatprep.subr.bf16.mxu0 %v3747_v29  ;;  %3265 = vmatpush3.bf16.msra.mxu1 %v3762_v49 }
 0x159   :  { %3266 = vmatprep.subr.bf16.mxu1 %v3763_v50 }
 0x15b   :  { %3245 = vmatpush3.bf16.msra.mxu0 %v3748_v30 }
 0x15c   :  { %3246 = vmatprep.subr.bf16.mxu0 %v3749_v31  ;;  %3267 = vmatpush3.bf16.msra.mxu1 %v3764_v51 }
 0x15d   :  { %3268 = vmatprep.subr.bf16.mxu1 %v3765_v53 }
 0x15f   :  { %3247 = vmatpush3.bf16.msra.mxu0 %v3750_v32 }
 0x160   :  { %3248 = vmatprep.subr.bf16.mxu0 %v3751_v33  ;;  %3269 = vmatpush3.bf16.msra.mxu1 %v3766_v54 }
 0x161   :  { %3270 = vmatprep.subr.bf16.mxu1 %v3767_v55 }
 0x163   :  { %3249 = vmatpush3.bf16.msra.mxu0 %v3752_v34 }
 0x164   :  { %3250 = vmatprep.subr.bf16.mxu0 %v3753_v35  ;;  %3271 = vmatpush3.bf16.msra.mxu1 %v3768_v56 }
 0x165   :  { %v1703_v7 = vpop.f32.mrb[0].mxu0  ;;  %3272 = vmatprep.subr.bf16.mxu1 %v3769_v57  ;;  %v3158_v57 = vld [vmem:[%s4211_s8] ss:$0 sm:$0xff] }
 0x166   :  { %v1744_v8 = vpop.f32.mrb[0].mxu1  ;;  %v1705_v52 = vpop.f32.mrb[1].mxu0 }
 0x167   :  { %v1745_v48 = vadd.f32 %v1744_v8, %v1703_v7  ;;  %v1746_v36 = vpop.f32.mrb[1].mxu1  ;;  %v1707_v38 = vpop.f32.mrb[2].mxu0  ;;  %3251 = vmatpush3.bf16.msra.mxu0 %v3754_v17  ;;  %v2024_v17 = vsub.s32 2, %v4116_v59 }
 0x168   :  { %v1747_v37 = vadd.f32 %v1746_v36, %v1705_v52  ;;  %v1748_v39 = vpop.f32.mrb[2].mxu1  ;;  %v1708_v42 = vpop.f32.mrb[3].mxu0  ;;  %3252 = vmatprep.subr.bf16.mxu0 %v3755_v18  ;;  %3273 = vmatpush3.bf16.msra.mxu1 %v3770_v63  ;;  %v2028_v18 = vsub.s32 3, %v4116_v59 }
 0x169   :  { %v1749_v43 = vpop.f32.mrb[3].mxu1  ;;  %3274 = vmatprep.subr.bf16.mxu1 %v3771_v6  ;;  %v2025_v52 = vrot.slane %v2012_v61, %v2024_v17 }
 0x16a   :  { %v2029_v39 = vrot.slane %v2012_v61, %v2028_v18 }
 0x16b   :  { %3253 = vmatpush3.bf16.msra.mxu0 %v3756_v40 }
 0x16c   :  { %3254 = vmatprep.subr.bf16.mxu0 %v3757_v41  ;;  %3275 = vmatpush3.bf16.msra.mxu1 %v3772_v13 }
 0x16d   :  { %3276 = vmatprep.subr.bf16.mxu1 %v3773_v21 }
 0x16f   :  { %3255 = vmatpush3.bf16.msra.mxu0 %v3758_v47 }
 0x170   :  { %3277 = vmatpush3.bf16.msra.mxu1 %v3774_v23 }
 0x1a5   :  { %v1785_v0 = vpop.f32.mrb[4].mxu0 }
 0x1a6   :  { %v1826_v1 = vpop.f32.mrb[4].mxu1  ;;  %v1786_v2 = vadd.f32 %v1785_v0, %v1745_v48  ;;  %v1787_v4 = vpop.f32.mrb[5].mxu0 }
 0x1a7   :  { %v1828_v5 = vpop.f32.mrb[5].mxu1  ;;  %v1788_v9 = vadd.f32 %v1787_v4, %v1747_v37  ;;  %v1789_v11 = vpop.f32.mrb[6].mxu0 }
 0x1a8   :  { %v1830_v12 = vpop.f32.mrb[6].mxu1  ;;  %v1827_v14 = vadd.f32 %v1826_v1, %v1786_v2  ;;  %v1790_v15 = vpop.f32.mrb[7].mxu0 }
 0x1a9   :  { %v1831_v16 = vpop.f32.mrb[7].mxu1  ;;  %v1829_v19 = vadd.f32 %v1828_v5, %v1788_v9 }
 0x1aa   :  { %v4123_v20 = vadd.f32 %v2017_v3, %v1827_v14 }
 0x1ab   :  { %v4125_v22 = vadd.f32 %v2021_v10, %v1829_v19 }
 0x1ac   :  { %v2038_v25 = vpack.c.bf16 %v4123_v20, %v4123_v20 }
 0x1ad   :  { %v2039_v24 = vpack.c.bf16 %v4125_v22, %v4125_v22 }
 0x1af   :  { %2337 = vmatprep.mubr.bf16.mxu0 %v2039_v24 }
 0x1b0   :  { %2338 = vmatmul.mubr.bf16.vlgmr.msra.gmra.mrb[16].mxu0 %v2038_v25 }
 0x1e5   :  { %v1867_v26 = vpop.f32.mrb[8].mxu0 }
 0x1e6   :  { %v1908_v27 = vpop.f32.mrb[8].mxu1  ;;  %v1869_v29 = vpop.f32.mrb[9].mxu0 }
 0x1e7   :  { %v1909_v28 = vadd.f32 %v1908_v27, %v1867_v26  ;;  %v1910_v30 = vpop.f32.mrb[9].mxu1  ;;  %v1871_v32 = vpop.f32.mrb[10].mxu0 }
 0x1e8   :  { %v1911_v31 = vadd.f32 %v1910_v30, %v1869_v29  ;;  %v1912_v33 = vpop.f32.mrb[10].mxu1  ;;  %v1872_v34 = vpop.f32.mrb[11].mxu0 }
 0x1e9   :  { %v1913_v35 = vpop.f32.mrb[11].mxu1 }
 0x225   :  { %v1949_v7 = vpop.f32.mrb[12].mxu0 }
 0x226   :  { %v1990_v8 = vpop.f32.mrb[12].mxu1  ;;  %v1950_v48 = vadd.f32 %v1949_v7, %v1909_v28  ;;  %v1951_v36 = vpop.f32.mrb[13].mxu0 }
 0x227   :  { %v1992_v37 = vpop.f32.mrb[13].mxu1  ;;  %v1952_v38 = vadd.f32 %v1951_v36, %v1911_v31  ;;  %v1953_v40 = vpop.f32.mrb[14].mxu0 }
 0x228   :  { %v1994_v41 = vpop.f32.mrb[14].mxu1  ;;  %v1991_v42 = vadd.f32 %v1990_v8, %v1950_v48  ;;  %v1954_v43 = vpop.f32.mrb[15].mxu0 }
 0x229   :  { %v1995_v44 = vpop.f32.mrb[15].mxu1  ;;  %v1993_v45 = vadd.f32 %v1992_v37, %v1952_v38 }
 0x22a   :  { %v4133_v46 = vadd.f32 %v2025_v52, %v1991_v42 }
 0x22b   :  { %v4135_v47 = vadd.f32 %v2029_v39, %v1993_v45 }
 0x22c   :  { %v2040_v50 = vpack.c.bf16 %v4133_v46, %v4133_v46 }
 0x22d   :  { %v2041_v49 = vpack.c.bf16 %v4135_v47, %v4135_v47 }
 0x22f   :  { %2377 = vmatprep.mubr.bf16.mxu1 %v2041_v49 }
 0x230   :  { %2378 = vmatmul.mubr.bf16.vlgmr.msra.gmra.mrb[16].mxu1 %v2040_v50 }
 0x283   :  { %v3256_v51 = vpop.f32.mrb[16].mxu0 }
 0x284   :  { %v3257_v53 = vpop.f32.mrb[17].mxu0 }
 0x285   :  { %v3258_v54 = vadd.f32 %v3257_v53, %v3256_v51  ;;  %v3259_v55 = vpop.f32.mrb[18].mxu0 }
 0x286   :  { %v3260_v56 = vpop.f32.mrb[19].mxu0 }
 0x287   :  { %v2340_v62 = vadd.f32 %v3258_v54, %v3158_v57 }
 0x303   :  { %v3278_v60 = vpop.f32.mrb[16].mxu1  ;;  %2891 = sbr.rel (%p3191_p6) target bundleno = 867 (0x363), region = 78 }
 0x304   :  { %v3279_v61 = vpop.f32.mrb[17].mxu1 }
 0x305   :  { %v3280_v63 = vadd.f32 %v3279_v61, %v3278_v60  ;;  %v3281_v0 = vpop.f32.mrb[18].mxu1 }
 0x306   :  { %v3282_v1 = vpop.f32.mrb[19].mxu1 }
 0x307   :  { %v2380_v2 = vadd.f32 %v3280_v63, %v2340_v62 }
 0x309   :  { %2385 = vst [vmem:[#allocation15] sm:$0xff] %v2380_v2 }
 0x30a LB: > { %s4156_s23 = sadd.s32 %s3959_s21, %s4205_s2  ;;  %v3971_v33 = vmov 1966171168   ;;  %vm2490_vm3 = vcmp.lt.s32.totalorder %v2014_v58, 512  ;;  %s2396_s21 = sadd.s32 1, %s3959_s21   ;;  %s3959_s21 = sphi %s4147_s21, %s2396_s21  }
 0x30b   : > { %s2401_s24 = sld [smem:[#allocation6 + %s4156_s23]]  ;;  %v2465_v34 = vunpack.c.l.s4 %v3971_v33  ;;  %s2449_s27 = sshra.s32 %s4156_s23, 3 }
 0x30c   : > { %s2400_s25 = sld [smem:[#allocation5 + %s4156_s23]]  ;;  %s2452_s28 = sand.u32 7, %s4156_s23 }
 0x30d   : > { %v2466_v8 = vunpack.c.0.s8 %v2465_v34  ;;  %s3239_s30 = sshll.u32 %s2449_s27, 5  ;;  %p2395_p8 = scmp.ge.s32.totalorder %s2396_s21, %s4206_s3 }
 0x30e   : > { %s2455_s11 = sadd.s32 %s3239_s30, %s2452_s28 }
 0x30f   : > { %v2469_v39 = vsub.s32 %v2466_v8, %v4116_v59  ;;  %s2456_s12 = scalar_lea.vmem [#allocation3], %s2455_s11 }
 0x310   : > { %v2457_v53 = vld [vmem:[%s2456_s12] ss:$8 sm:$0xf] }
 0x311   : > { %p2402_p7 = scmp.gt.s32.totalorder %s2401_s24, 1 }
 0x312   : > { %s2410_s26 = sadd.s32 %s2401_s24, %s2400_s25  ;;  %v2408_v5 = vstv %s2400_s25 }
 0x313   : > { %s2403_s5 = scalar_select %p2402_p7, %s2401_s24, 1  ;;  %v2411_v6 = vstv %s2410_s26  ;;  %vm2409_vm0 = vcmp.ge.s32.totalorder %v4116_v59, %v2408_v5 }
 0x314   : > { %vm2412_vm1 = vcmp.lt.s32.totalorder %v4116_v59, %v2411_v6 }
 0x315   : > { %s2404_s22 = scvt.s32.f32 %s2403_s5  ;;  %vm2413_vm2 = vmand %vm2409_vm0, %vm2412_vm1 }
 0x316   : > { %v2416_v9 = vsel %vm2413_vm2, %v4123_v20, 0.0  ;;  %v2417_v10 = vsel %vm2413_vm2, %v4125_v22, 0.0  ;;  %v2418_v11 = vsel %vm2413_vm2, %v4133_v46, 0.0  ;;  %v2419_v12 = vsel %vm2413_vm2, %v4135_v47, 0.0 }
 0x317   : > { %v2405_v3 = vstv %s2404_s22  ;;  %v2420_v13 = vrot.slane %v2416_v9, 4  ;;  %v2426_v14 = vrot.slane %v2417_v10, 4  ;;  %v2432_v15 = vrot.slane %v2418_v11, 4 }
 0x318   : > { %3775 = vrcp.f32 %v2405_v3  ;;  %v2438_v16 = vrot.slane %v2419_v12, 4 }
 0x319   : > { %v2421_v19 = vadd.f32 %v2420_v13, %v2416_v9  ;;  %v2427_v21 = vadd.f32 %v2426_v14, %v2417_v10  ;;  %v2433_v23 = vadd.f32 %v2432_v15, %v2418_v11 }
 0x31a   : > { %v2439_v24 = vadd.f32 %v2438_v16, %v2419_v12 }
 0x31b   : > { %v2422_v25 = vrot.slane %v2421_v19, 2  ;;  %v2428_v26 = vrot.slane %v2427_v21, 2  ;;  %v2434_v27 = vrot.slane %v2433_v23, 2 }
 0x31c   : > { %v2440_v28 = vrot.slane %v2439_v24, 2 }
 0x31d   : > { %v2423_v29 = vadd.f32 %v2422_v25, %v2421_v19  ;;  %v2429_v30 = vadd.f32 %v2428_v26, %v2427_v21  ;;  %v2435_v31 = vadd.f32 %v2434_v27, %v2433_v23 }
 0x31e   : > { %v2441_v32 = vadd.f32 %v2440_v28, %v2439_v24 }
 0x31f   : > { %v2424_v35 = vrot.slane %v2423_v29, 1  ;;  %v2430_v17 = vrot.slane %v2429_v30, 1  ;;  %v2436_v18 = vrot.slane %v2435_v31, 1 }
 0x320   : > { %v2442_v7 = vrot.slane %v2441_v32, 1 }
 0x321   : > { %v2425_v48 = vadd.f32 %v2424_v35, %v2423_v29  ;;  %v2431_v52 = vadd.f32 %v2430_v17, %v2429_v30  ;;  %v2437_v36 = vadd.f32 %v2436_v18, %v2435_v31 }
 0x322   : > { %v3776_v4 = vpop.eup %3775  ;;  %v2443_v37 = vadd.f32 %v2442_v7, %v2441_v32 }
 0x323   : > { %3328 = vpush %v3776_v4 }
 0x354   : > { %s3329_s29 = spop %3328 }
 0x355   : > { %v2444_v38 = vstv %s3329_s29 }
 0x356   : > { %v2445_v40 = vmul.f32 %v2444_v38, %v2425_v48  ;;  %v2446_v41 = vmul.f32 %v2444_v38, %v2431_v52  ;;  %v2447_v42 = vmul.f32 %v2444_v38, %v2437_v36  ;;  %v2448_v43 = vmul.f32 %v2444_v38, %v2443_v37 }
 0x358   : > { %v2462_v44 = vcombine.low %v2445_v40, %v2446_v41  ;;  %v2463_v45 = vcombine.low %v2447_v42, %v2448_v43 }
 0x35a   : > { %v2470_v49 = vrot.slane %v2462_v44, %v2469_v39  ;;  %v2477_v50 = vrot.slane %v2463_v45, %v2469_v39 }
 0x35c   : > { %v2478_v51 = vcombine.low %v2470_v49, %v2477_v50  ;;  %2398 = sbr.rel (!%p2395_p8) target bundleno = 778 (0x30a), region = 84 }
 0x35e   : > { %v2485_v54 = vrot.slane %v2478_v51, %v2469_v39 }
 0x360   : > { %v2487_v55 = vadd.f32 %v2485_v54, %v2457_v53 }
 0x362   : > { %2492 = vst.msk [vmem:[%s2456_s12] ss:$8 sm:$0xf] %vm2490_vm3, %v2487_v55 }
 0x363 PF:  { %v3777_v56 = vld [vmem:[#allocation14 + $0x40] sm:$0xff]   ;;  %v3781_v62 = vld [vmem:[#allocation14 + $0x48] sm:$0xff]   ;;  %v3785_v2 = vld [vmem:[#allocation14 + $0x50] sm:$0xff]   ;;  %vm2501_vm4 = vcmp.lt.s32.totalorder %v4116_v59, 2  ;;  %s3972_s2 = smov [#allocation15]  }
 0x364   :  { %v3778_v57 = vld [vmem:[#allocation14 + $0xc0] sm:$0xff]   ;;  %3284 = vmatprep.subr.bf16.mxu0 %v3777_v56  ;;  %v3782_v63 = vld [vmem:[#allocation14 + $0xc8] sm:$0xff]   ;;  %v3786_v3 = vld [vmem:[#allocation14 + $0xd0] sm:$0xff]   ;;  %s2862_s3 = sshll.u32 %s3972_s2, 4  ;;  %s2863_s3 = int_to_ptr.vmem [resolvable:$true] %s2862_s3 }
 0x365   :  { %v3779_v60 = vld [vmem:[#allocation14] sm:$0xff]   ;;  %3306 = vmatprep.subr.bf16.mxu1 %v3778_v57  ;;  %v3783_v0 = vld [vmem:[#allocation14 + $0x8] sm:$0xff]   ;;  %v3787_v58 = vld [vmem:[#allocation14 + $0x10] sm:$0xff]   ;;  %s3899_s14 = scalar_lea.vmem %s2863_s3, 128  ;;  %p3904_p10 = scmp.lt.s32.totalorder %s2863_s3, %s2863_s3 }
 0x366   :  { %v3780_v61 = vld [vmem:[#allocation14 + $0x80] sm:$0xff]   ;;  %3285 = vmatpush3.bf16.msra.mxu0 %v3779_v60  ;;  %v3784_v1 = vld [vmem:[#allocation14 + $0x88] sm:$0xff]   ;;  %v3788_v20 = vld [vmem:[#allocation14 + $0x90] sm:$0xff]   ;;  %p3900_p9 = scmp.ne.s32.totalorder %s2863_s3, %s3899_s14  ;;  %p3905_p11 = scmp.lt.s32.totalorder %s3899_s14, %s3899_s14 }
 0x367   :  { %3307 = vmatpush3.bf16.msra.mxu1 %v3780_v61  ;;  %3286 = vmatprep.subr.bf16.mxu0 %v3781_v62  ;;  %v3789_v22 = vld [vmem:[#allocation14 + $0x58] sm:$0xff]   ;;  %v3793_v5 = vld [vmem:[#allocation14 + $0x60] sm:$0xff]   ;;  %v3797_v11 = vld [vmem:[#allocation14 + $0x68] sm:$0xff]  }
 0x368   :  { %3308 = vmatprep.subr.bf16.mxu1 %v3782_v63  ;;  %v3790_v46 = vld [vmem:[#allocation14 + $0xd8] sm:$0xff]   ;;  %v3794_v6 = vld [vmem:[#allocation14 + $0xe0] sm:$0xff]   ;;  %v3798_v12 = vld [vmem:[#allocation14 + $0xe8] sm:$0xff]   ;;  %p3906_p12 = por %p3905_p11, %p3904_p10 }
 0x369   :  { %v3791_v47 = vld [vmem:[#allocation14 + $0x18] sm:$0xff]   ;;  %v3795_v9 = vld [vmem:[#allocation14 + $0x20] sm:$0xff]   ;;  %v3799_v13 = vld [vmem:[#allocation14 + $0x28] sm:$0xff]  }
 0x36a   :  { %3287 = vmatpush3.bf16.msra.mxu0 %v3783_v0  ;;  %v3792_v4 = vld [vmem:[#allocation14 + $0x98] sm:$0xff]   ;;  %v3796_v10 = vld [vmem:[#allocation14 + $0xa0] sm:$0xff]   ;;  %v3800_v14 = vld [vmem:[#allocation14 + $0xa8] sm:$0xff]   ;;  %p3907_p13 = pnand %p3906_p12, %p3900_p9 }
 0x36b   :  { %3309 = vmatpush3.bf16.msra.mxu1 %v3784_v1  ;;  %3288 = vmatprep.subr.bf16.mxu0 %v3785_v2  ;;  %v3801_v15 = vld [vmem:[#allocation14 + $0x70] sm:$0xff]   ;;  %v3805_v23 = vld [vmem:[#allocation14 + $0x78] sm:$0xff]   ;;  %v2498_v27 = vld [vmem:[#allocation3 + $0x8] sm:$0xff] }
 0x36c   :  { %3310 = vmatprep.subr.bf16.mxu1 %v3786_v3  ;;  %v3802_v16 = vld [vmem:[#allocation14 + $0xf0] sm:$0xff]   ;;  %v3806_v24 = vld [vmem:[#allocation14 + $0xf8] sm:$0xff]   ;;  %vm3227_vm5 = vmpackc.low %vm2501_vm4, %vm2501_vm4  ;;  %v3228_v29 = vpack.c.bf16 %v2498_v27, %v2498_v27 }
 0x36d   :  { %v3803_v19 = vld [vmem:[#allocation14 + $0x30] sm:$0xff]   ;;  %v3807_v25 = vld [vmem:[#allocation14 + $0x38] sm:$0xff]   ;;  %v2497_v31 = vld [vmem:[#allocation3] sm:$0xff] }
 0x36e   :  { %3289 = vmatpush3.bf16.msra.mxu0 %v3787_v58  ;;  %v3804_v21 = vld [vmem:[#allocation14 + $0xb0] sm:$0xff]   ;;  %v3808_v26 = vld [vmem:[#allocation14 + $0xb8] sm:$0xff]   ;;  %v3231_v33 = vpack.c.bf16 %v2497_v31, %v2497_v31  ;;  %3229 = vmatprep.mubr.msk.bf16.mxu0 %vm3227_vm5, %v3228_v29 }
 0x36f   :  { %3311 = vmatpush3.bf16.msra.mxu1 %v3788_v20  ;;  %3290 = vmatprep.subr.bf16.mxu0 %v3789_v22  ;;  %v2500_v28 = vld [vmem:[#allocation3 + $0x18] sm:$0xff]  ;;  %v2499_v32 = vld [vmem:[#allocation3 + $0x10] sm:$0xff] }
 0x370   :  { %3312 = vmatprep.subr.bf16.mxu1 %v3790_v46  ;;  %v3234_v30 = vpack.c.bf16 %v2500_v28, %v2500_v28  ;;  %v3237_v34 = vpack.c.bf16 %v2499_v32, %v2499_v32 }
 0x372   :  { %3291 = vmatpush3.bf16.msra.mxu0 %v3791_v47  ;;  %3235 = vmatprep.mubr.msk.bf16.mxu1 %vm3227_vm5, %v3234_v30 }
 0x373   :  { %3313 = vmatpush3.bf16.msra.mxu1 %v3792_v4  ;;  %3292 = vmatprep.subr.bf16.mxu0 %v3793_v5 }
 0x374   :  { %3314 = vmatprep.subr.bf16.mxu1 %v3794_v6 }
 0x376   :  { %3293 = vmatpush3.bf16.msra.mxu0 %v3795_v9 }
 0x377   :  { %3315 = vmatpush3.bf16.msra.mxu1 %v3796_v10  ;;  %3294 = vmatprep.subr.bf16.mxu0 %v3797_v11 }
 0x378   :  { %3316 = vmatprep.subr.bf16.mxu1 %v3798_v12 }
 0x37a   :  { %3295 = vmatpush3.bf16.msra.mxu0 %v3799_v13 }
 0x37b   :  { %3317 = vmatpush3.bf16.msra.mxu1 %v3800_v14  ;;  %3296 = vmatprep.subr.bf16.mxu0 %v3801_v15 }
 0x37c   :  { %3318 = vmatprep.subr.bf16.mxu1 %v3802_v16 }
 0x37e   :  { %3297 = vmatpush3.bf16.msra.mxu0 %v3803_v19 }
 0x37f   :  { %3319 = vmatpush3.bf16.msra.mxu1 %v3804_v21  ;;  %3298 = vmatprep.subr.bf16.mxu0 %v3805_v23 }
 0x380   :  { %3320 = vmatprep.subr.bf16.mxu1 %v3806_v24 }
 0x382   :  { %3299 = vmatpush3.bf16.msra.mxu0 %v3807_v25 }
 0x383   :  { %3321 = vmatpush3.bf16.msra.mxu1 %v3808_v26 }
 0x385   :  { %3232 = vmatmul.mubr.msk.bf16.vlgmr.msra.gmra.mrb[20].mxu0 %vm3227_vm5, %v3231_v33 }
 0x386   :  { %3238 = vmatmul.mubr.msk.bf16.vlgmr.msra.gmra.mrb[20].mxu1 %vm3227_vm5, %v3237_v34 }
 0x387   :  { %3910 = shalt.err (!%p3907_p13)
}
 0x388   :  { %s3911_s7 = scalar_lea.hbm %s4212_s9, 128 }
 0x389   :  { %p3912_p0 = scmp.ne.s32.totalorder %s4212_s9, %s3911_s7  ;;  %p3915_p1 = scmp.lt.u32.totalorder %s3911_s7, %s4212_s9 }
 0x38b   :  { %p3917_p2 = pnand %p3915_p1, %p3912_p0 }
 0x38d   :  { %3920 = shalt.err (!%p3917_p2)
}
 0x38e   :  { %2865 = dma.vmem_to_hbm [thread:$0]  %s2863_s3, 128, %s4212_s9, [#allocation11]   ;;  %v3194_v17 = vld [vmem:[%s4211_s8] ss:$0 sm:$0xff] }
 0x38f   :  { %s3973_s23 = smov [#allocation16]  }
 0x390   :  { %s2872_s24 = sshll.u32 %s3973_s23, 4  ;;  %s2873_s24 = int_to_ptr.vmem [resolvable:$true] %s2872_s24 }
 0x391   :  { %s3921_s9 = scalar_lea.vmem %s2873_s24, 128  ;;  %p3926_p4 = scmp.lt.s32.totalorder %s2873_s24, %s2873_s24 }
 0x392   :  { %p3922_p3 = scmp.ne.s32.totalorder %s2873_s24, %s3921_s9  ;;  %p3927_p5 = scmp.lt.s32.totalorder %s3921_s9, %s3921_s9 }
 0x394   :  { %p3928_p6 = por %p3927_p5, %p3926_p4 }
 0x396   :  { %p3929_p7 = pnand %p3928_p6, %p3922_p3 }
 0x458   :  { %v3300_v59 = vpop.f32.mrb[20].mxu0 }
 0x459   :  { %v3322_v35 = vpop.f32.mrb[20].mxu1  ;;  %v3301_v18 = vpop.f32.mrb[21].mxu0 }
 0x45a   :  { %v3323_v7 = vpop.f32.mrb[21].mxu1  ;;  %v3302_v8 = vadd.f32 %v3301_v18, %v3300_v59  ;;  %v3303_v52 = vpop.f32.mrb[22].mxu0 }
 0x45b   :  { %v3324_v48 = vadd.f32 %v3323_v7, %v3322_v35  ;;  %v3325_v36 = vpop.f32.mrb[22].mxu1  ;;  %v3304_v37 = vpop.f32.mrb[23].mxu0 }
 0x45c   :  { %v3326_v38 = vpop.f32.mrb[23].mxu1  ;;  %v2810_v39 = vadd.f32 %v3302_v8, %v3194_v17 }
 0x45e   :  { %v2850_v40 = vadd.f32 %v3324_v48, %v2810_v39 }
 0x460   :  { %2855 = vst [vmem:[#allocation16] sm:$0xff] %v2850_v40 }
 0x461   :  { %3932 = shalt.err (!%p3929_p7)
}
 0x462   :  { %s3933_s22 = scalar_lea.hbm %s4213_s10, 128 }
 0x463   :  { %p3934_p8 = scmp.ne.s32.totalorder %s4213_s10, %s3933_s22  ;;  %p3937_p9 = scmp.lt.u32.totalorder %s3933_s22, %s4213_s10 }
 0x465   :  { %p3939_p10 = pnand %p3937_p9, %p3934_p8 }
 0x467   :  { %3942 = shalt.err (!%p3939_p10)
}
 0x468   :  { %2875 = dma.vmem_to_hbm [thread:$0]  %s2873_s24, 128, %s4213_s10, [#allocation17]  }
 0x469   :  { %3953 = dma.done.wait [#allocation11], 128  }
 0x46a   :  { %3954 = vsyncadd [#allocation11], 4294967168 }
 0x46b   :  { %3955 = dma.done.wait [#allocation17], 128  }
 0x46c   :  { %3956 = vsyncadd [#allocation17], 4294967168 }
 0x46d   :  { %2882 = vsyncpa [#allocation10], 1 }
 0x46e   :  { %2883 = vsyncpa [#allocation13], 1 }
 0x46f   :  { %2884 = vsyncpa [#allocation11], 1 }
 0x470   :  { %2885 = vsyncpa [#allocation17], 1 }

</bundles_post_ra>
